<compile_context>
chip_gen: v6e
topology: v6e:2x2x1
jax: 0.10.0
libtpu: 0.0.40
codegen_flags: <defaults>
</compile_context>

<pallas_src>
import numpy as np
import jax
import jax.numpy as jnp
from jax.experimental import pallas as pl
from jax.experimental.pallas import tpu as pltpu

EPS = 1e-5      # PyTorch BatchNorm1d default eps
LANE = 128      # TPU lane width

_VMEM = pl.BlockSpec(memory_space=pltpu.MemorySpace.VMEM)


# --------------------------------------------------------------------------
# build-time helpers (run once, outside the kernel)
# --------------------------------------------------------------------------

def _pad_to_lane(c):
    return max(LANE, ((c + LANE - 1) // LANE) * LANE)


def _scatter_mats(N, L_in, L_out, K, stride, pad):
    """S[k] is an (N*L_out, N*L_in) 0/1 matrix, block-diagonal over the batch,
    with S[k][n*L_out + t, n*L_in + l] = 1 iff t == l*stride - pad + k.
    `sum_k S[k] @ (h @ W[:, :, k])` is exactly ConvTranspose1d."""
    l = np.arange(L_in)[None, None, :]
    t = np.arange(L_out)[None, :, None]
    k = np.arange(K)[:, None, None]
    s = (t == l * stride - pad + k).astype(np.float32)        # (K, L_out, L_in)
    eye = np.eye(N, dtype=np.float32)
    full = np.stack([np.kron(eye, s[i]) for i in range(K)], axis=0)
    return jnp.asarray(full)                                  # (K, N*Lo, N*Li)


def _weight_taps(w, c_in_pad, c_out_pad):
    """PyTorch ConvTranspose1d weight (C_in, C_out, K) -> (K, c_in_pad,
    c_out_pad) per-tap matrices, zero-padded to full 128-lane widths."""
    c_in, c_out, _ = w.shape
    wt = jnp.transpose(w, (2, 0, 1)).astype(jnp.float32)
    return jnp.pad(wt, ((0, 0), (0, c_in_pad - c_in), (0, c_out_pad - c_out)))


def _pad_row(v, c_pad):
    v = v.astype(jnp.float32)
    return jnp.pad(v, (0, c_pad - v.shape[0])).reshape(1, c_pad)


# --------------------------------------------------------------------------
# fused kernel
# --------------------------------------------------------------------------

def _make_fused_kernel(bn_meta, k_final):
    """bn_meta: tuple of (num_taps, num_rows_out) per ConvT+BN+ReLU block."""

    def kernel(*refs):
        # refs = [x, (S, W, gamma, beta) * 3, S_final, W_final, out]
        out_ref = refs[-1]
        h = refs[0][...]                                  # (N*L0, C0_pad)
        idx = 1
        for num_taps, rows in bn_meta:
            s_ref, w_ref, g_ref, b_ref = refs[idx:idx + 4]
            idx += 4
            # ConvTranspose1d: K accumulated per-tap matmuls, f32 MXU accum.
            z = None
            for k in range(num_taps):
                hw = jnp.dot(h, w_ref[k], preferred_element_type=jnp.float32)
                contrib = jnp.dot(s_ref[k], hw, preferred_element_type=jnp.float32)
                z = contrib if z is None else z + contrib
            # BatchNorm1d (training mode): one-pass batch stats over N*L rows.
            inv_r = 1.0 / rows
            mean = jnp.sum(z, axis=0, keepdims=True) * inv_r
            ex2 = jnp.sum(z * z, axis=0, keepdims=True) * inv_r
            var = jnp.maximum(ex2 - mean * mean, 0.0)     # biased variance
            inv = jax.lax.rsqrt(var + EPS)
            h = jnp.maximum((z - mean) * inv * g_ref[...] + b_ref[...], 0.0)

        # Final ConvTranspose1d(C, 1) + Tanh.  C_out is padded to 128 so the
        # output store is lane-dense; only column 0 carries the real signal.
        s_ref, w_ref = refs[idx], refs[idx + 1]
        z = None
        for k in range(k_final):
            hw = jnp.dot(h, w_ref[k], preferred_element_type=jnp.float32)
            contrib = jnp.dot(s_ref[k], hw, preferred_element_type=jnp.float32)
            z = contrib if z is None else z + contrib
        out_ref[...] = jnp.tanh(z).astype(out_ref.dtype)

    return kernel


# --------------------------------------------------------------------------
# decoder builder: hoists all weight prep out of the per-call forward pass
# --------------------------------------------------------------------------

def build_decoder(params, N, L0):
    """Precompute per-tap padded weights, scatter matrices and padded BN
    params, instantiate the single fused pallas_call, and return a jitted
    forward(x) for x of shape (N, latent_dim, L0) (PyTorch NCL layout)."""
    c_lat = params["bn_blocks"][0][0].shape[0]
    c0_pad = _pad_to_lane(c_lat)

    const_args = []
    bn_meta = []
    c_prev_pad, L = c0_pad, L0
    for (w, stride, pad, gamma, beta) in params["bn_blocks"]:
        _, c_out, K = w.shape
        L_out = (L - 1) * stride - 2 * pad + K
        c_out_pad = _pad_to_lane(c_out)
        const_args += [
            _scatter_mats(N, L, L_out, K, stride, pad),
            _weight_taps(w, c_prev_pad, c_out_pad),
            _pad_row(gamma, c_out_pad),
            _pad_row(beta, c_out_pad),
        ]
        bn_meta.append((K, N * L_out))
        L, c_prev_pad = L_out, c_out_pad

    w4, stride4, pad4 = params["final"]
    _, c4, K4 = w4.shape
    L4 = (L - 1) * stride4 - 2 * pad4 + K4
    c4_pad = _pad_to_lane(c4)                 # 1 -> 128 (lane-dense store)
    const_args += [
        _scatter_mats(N, L, L4, K4, stride4, pad4),
        _weight_taps(w4, c_prev_pad, c4_pad),
    ]
    const_args = tuple(const_args)

    fused = pl.pallas_call(
        _make_fused_kernel(tuple(bn_meta), K4),
        out_shape=jax.ShapeDtypeStruct((N * L4, c4_pad), jnp.float32),
        in_specs=[_VMEM] * (1 + len(const_args)),
        out_specs=_VMEM,
    )

    def forward(x):
        # x: (N, latent_dim, L0) -> feature-last rows, padded to 128 lanes.
        h0 = jnp.transpose(x, (0, 2, 1)).reshape(N * L0, c_lat)
        h0 = jnp.pad(h0.astype(jnp.float32), ((0, 0), (0, c0_pad - c_lat)))
        y = fused(h0, *const_args)                       # (N*L4, 128)
        return y[:, 0].reshape(N, L4)[:, None, :]        # (N, 1, L4)

    return jax.jit(forward), L4


# --------------------------- parameter construction --------------------------

def init_params(key, latent_dim, window_size):
    """Same layer shapes / BatchNorm defaults as the PyTorch ConvDecoder."""
    k1 = window_size // (2 ** 3)
    keys = jax.random.split(key, 4)
    w1 = 0.1 * jax.random.normal(keys[0], (latent_dim, 256, k1), jnp.float32)
    w2 = 0.1 * jax.random.normal(keys[1], (256, 128, 4), jnp.float32)
    w3 = 0.1 * jax.random.normal(keys[2], (128, 64, 4), jnp.float32)
    w4 = 0.1 * jax.random.normal(keys[3], (64, 1, 4), jnp.float32)
    return {
        # (weight in PyTorch ConvTranspose1d layout (C_in, C_out, K), stride,
        #  padding, BN gamma, BN beta) — gamma=1 / beta=0 matches PyTorch init.
        "bn_blocks": [
            (w1, 1, 0, jnp.ones((256,), jnp.float32), jnp.zeros((256,), jnp.float32)),
            (w2, 2, 1, jnp.ones((128,), jnp.float32), jnp.zeros((128,), jnp.float32)),
            (w3, 2, 1, jnp.ones((64,), jnp.float32), jnp.zeros((64,), jnp.float32)),
        ],
        "final": (w4, 2, 1),     # ConvTranspose1d(64, 1, 4, 2, 1) + Tanh
    }


# ------------------------------ NumPy reference -------------------------------

def _reference_forward(x, params):
    """Straightforward NumPy float64 implementation of the PyTorch module
    (training-mode BatchNorm1d: biased batch variance, eps=1e-5)."""
    def convT(h, w, stride, pad):
        n, _, L_in = h.shape
        _, c_out, K = w.shape
        L_out = (L_in - 1) * stride - 2 * pad + K
        out = np.zeros((n, c_out, L_out))
        for l in range(L_in):
            for k in range(K):
                t = l * stride - pad + k
                if 0 <= t < L_out:
                    out[:, :, t] += h[:, :, l] @ w[:, :, k]
        return out

    h = np.asarray(x, np.float64)
    for (w, stride, pad, gamma, beta) in params["bn_blocks"]:
        z = convT(h, np.asarray(w, np.float64), stride, pad)
        mean = z.mean(axis=(0, 2), keepdims=True)
        var = z.var(axis=(0, 2), keepdims=True)
        zn = (z - mean) / np.sqrt(var + EPS)
        zn = zn * np.asarray(gamma, np.float64)[None, :, None] \
             + np.asarray(beta, np.float64)[None, :, None]
        h = np.maximum(zn, 0.0)
    w4, s4, p4 = params["final"]
    return np.tanh(convT(h, np.asarray(w4, np.float64), s4, p4))


# ----------------------------------- main ------------------------------------

if __name__ == "__main__":
    latent_dim = 16
    window_size = 32          # first kernel size = window_size // 8 = 4
    batch = 2

    key = jax.random.PRNGKey(0)
    pkey, xkey = jax.random.split(key)
    params = init_params(pkey, latent_dim, window_size)

    # DCGAN-style decoder input: (N, latent_dim, 1), PyTorch NCL layout.
    x = jax.random.normal(xkey, (batch, latent_dim, 1), jnp.float32)

    forward, L_out = build_decoder(params, batch, L0=1)
    out = jax.block_until_ready(forward(x))

    assert out.shape == (batch, 1, window_size), out.shape
    assert L_out == window_size
    assert bool(jnp.all(jnp.isfinite(out)))
    assert bool(jnp.all(jnp.abs(out) <= 1.0 + 1e-6))     # tanh range

    ref = _reference_forward(np.asarray(x), params)
    np.testing.assert_allclose(np.asarray(out), ref, rtol=2e-3, atol=2e-3)

    print("KERNEL_OK")
</pallas_src>

<mosaic_0001>
module attributes {stable_mosaic.version = 11 : i64} {
  func.func @kernel(%arg0: memref<2x128xf32, #tpu.memory_space<vmem>>, %arg1: memref<4x8x2xf32, #tpu.memory_space<vmem>>, %arg2: memref<4x128x256xf32, #tpu.memory_space<vmem>>, %arg3: memref<1x256xf32, #tpu.memory_space<vmem>>, %arg4: memref<1x256xf32, #tpu.memory_space<vmem>>, %arg5: memref<4x16x8xf32, #tpu.memory_space<vmem>>, %arg6: memref<4x256x128xf32, #tpu.memory_space<vmem>>, %arg7: memref<1x128xf32, #tpu.memory_space<vmem>>, %arg8: memref<1x128xf32, #tpu.memory_space<vmem>>, %arg9: memref<4x32x16xf32, #tpu.memory_space<vmem>>, %arg10: memref<4x128x128xf32, #tpu.memory_space<vmem>>, %arg11: memref<1x128xf32, #tpu.memory_space<vmem>>, %arg12: memref<1x128xf32, #tpu.memory_space<vmem>>, %arg13: memref<4x64x32xf32, #tpu.memory_space<vmem>>, %arg14: memref<4x128x128xf32, #tpu.memory_space<vmem>>, %arg15: memref<64x128xf32, #tpu.memory_space<vmem>>) attributes {dimension_semantics = [], scalar_prefetch = 0 : i64, scratch_operands = 0 : i64, tpu.core_type = #tpu.core_type<tc>} {
    %c0 = arith.constant 0 : index
    %c0_0 = arith.constant 0 : index
    %0 = vector.load %arg0[%c0, %c0_0] : memref<2x128xf32, #tpu.memory_space<vmem>>, vector<2x128xf32>
    %c0_1 = arith.constant 0 : index
    %c0_2 = arith.constant 0 : index
    %c0_3 = arith.constant 0 : index
    %1 = vector.load %arg2[%c0_1, %c0_2, %c0_3] : memref<4x128x256xf32, #tpu.memory_space<vmem>>, vector<1x128x256xf32>
    %2 = vector.shape_cast %1 : vector<1x128x256xf32> to vector<128x256xf32>
    %cst = arith.constant dense<0.000000e+00> : vector<2x256xf32>
    %3 = tpu.matmul %0, %2, %cst {dimension_numbers = #tpu.dot_dimension_numbers<[1], [0], [0], [1], [0, 0, 1, 1], [], []>} : vector<2x128xf32>, vector<128x256xf32>, vector<2x256xf32> -> vector<2x256xf32>
    %c0_4 = arith.constant 0 : index
    %c0_5 = arith.constant 0 : index
    %c0_6 = arith.constant 0 : index
    %4 = vector.load %arg1[%c0_4, %c0_5, %c0_6] : memref<4x8x2xf32, #tpu.memory_space<vmem>>, vector<1x8x2xf32>
    %5 = vector.shape_cast %4 : vector<1x8x2xf32> to vector<8x2xf32>
    %cst_7 = arith.constant dense<0.000000e+00> : vector<8x256xf32>
    %6 = tpu.matmul %5, %3, %cst_7 {dimension_numbers = #tpu.dot_dimension_numbers<[1], [0], [0], [1], [0, 0, 1, 1], [], []>} : vector<8x2xf32>, vector<2x256xf32>, vector<8x256xf32> -> vector<8x256xf32>
    %c1 = arith.constant 1 : index
    %c0_8 = arith.constant 0 : index
    %c0_9 = arith.constant 0 : index
    %7 = vector.load %arg2[%c1, %c0_8, %c0_9] : memref<4x128x256xf32, #tpu.memory_space<vmem>>, vector<1x128x256xf32>
    %8 = vector.shape_cast %7 : vector<1x128x256xf32> to vector<128x256xf32>
    %cst_10 = arith.constant dense<0.000000e+00> : vector<2x256xf32>
    %9 = tpu.matmul %0, %8, %cst_10 {dimension_numbers = #tpu.dot_dimension_numbers<[1], [0], [0], [1], [0, 0, 1, 1], [], []>} : vector<2x128xf32>, vector<128x256xf32>, vector<2x256xf32> -> vector<2x256xf32>
    %c1_11 = arith.constant 1 : index
    %c0_12 = arith.constant 0 : index
    %c0_13 = arith.constant 0 : index
    %10 = vector.load %arg1[%c1_11, %c0_12, %c0_13] : memref<4x8x2xf32, #tpu.memory_space<vmem>>, vector<1x8x2xf32>
    %11 = vector.shape_cast %10 : vector<1x8x2xf32> to vector<8x2xf32>
    %cst_14 = arith.constant dense<0.000000e+00> : vector<8x256xf32>
    %12 = tpu.matmul %11, %9, %cst_14 {dimension_numbers = #tpu.dot_dimension_numbers<[1], [0], [0], [1], [0, 0, 1, 1], [], []>} : vector<8x2xf32>, vector<2x256xf32>, vector<8x256xf32> -> vector<8x256xf32>
    %13 = arith.addf %6, %12 : vector<8x256xf32>
    %c2 = arith.constant 2 : index
    %c0_15 = arith.constant 0 : index
    %c0_16 = arith.constant 0 : index
    %14 = vector.load %arg2[%c2, %c0_15, %c0_16] : memref<4x128x256xf32, #tpu.memory_space<vmem>>, vector<1x128x256xf32>
    %15 = vector.shape_cast %14 : vector<1x128x256xf32> to vector<128x256xf32>
    %cst_17 = arith.constant dense<0.000000e+00> : vector<2x256xf32>
    %16 = tpu.matmul %0, %15, %cst_17 {dimension_numbers = #tpu.dot_dimension_numbers<[1], [0], [0], [1], [0, 0, 1, 1], [], []>} : vector<2x128xf32>, vector<128x256xf32>, vector<2x256xf32> -> vector<2x256xf32>
    %c2_18 = arith.constant 2 : index
    %c0_19 = arith.constant 0 : index
    %c0_20 = arith.constant 0 : index
    %17 = vector.load %arg1[%c2_18, %c0_19, %c0_20] : memref<4x8x2xf32, #tpu.memory_space<vmem>>, vector<1x8x2xf32>
    %18 = vector.shape_cast %17 : vector<1x8x2xf32> to vector<8x2xf32>
    %cst_21 = arith.constant dense<0.000000e+00> : vector<8x256xf32>
    %19 = tpu.matmul %18, %16, %cst_21 {dimension_numbers = #tpu.dot_dimension_numbers<[1], [0], [0], [1], [0, 0, 1, 1], [], []>} : vector<8x2xf32>, vector<2x256xf32>, vector<8x256xf32> -> vector<8x256xf32>
    %20 = arith.addf %13, %19 : vector<8x256xf32>
    %c3 = arith.constant 3 : index
    %c0_22 = arith.constant 0 : index
    %c0_23 = arith.constant 0 : index
    %21 = vector.load %arg2[%c3, %c0_22, %c0_23] : memref<4x128x256xf32, #tpu.memory_space<vmem>>, vector<1x128x256xf32>
    %22 = vector.shape_cast %21 : vector<1x128x256xf32> to vector<128x256xf32>
    %cst_24 = arith.constant dense<0.000000e+00> : vector<2x256xf32>
    %23 = tpu.matmul %0, %22, %cst_24 {dimension_numbers = #tpu.dot_dimension_numbers<[1], [0], [0], [1], [0, 0, 1, 1], [], []>} : vector<2x128xf32>, vector<128x256xf32>, vector<2x256xf32> -> vector<2x256xf32>
    %c3_25 = arith.constant 3 : index
    %c0_26 = arith.constant 0 : index
    %c0_27 = arith.constant 0 : index
    %24 = vector.load %arg1[%c3_25, %c0_26, %c0_27] : memref<4x8x2xf32, #tpu.memory_space<vmem>>, vector<1x8x2xf32>
    %25 = vector.shape_cast %24 : vector<1x8x2xf32> to vector<8x2xf32>
    %cst_28 = arith.constant dense<0.000000e+00> : vector<8x256xf32>
    %26 = tpu.matmul %25, %23, %cst_28 {dimension_numbers = #tpu.dot_dimension_numbers<[1], [0], [0], [1], [0, 0, 1, 1], [], []>} : vector<8x2xf32>, vector<2x256xf32>, vector<8x256xf32> -> vector<8x256xf32>
    %27 = arith.addf %20, %26 : vector<8x256xf32>
    %cst_29 = arith.constant dense<0.000000e+00> : vector<256xf32>
    %28 = vector.multi_reduction <add>, %27, %cst_29 [0] : vector<8x256xf32> to vector<256xf32>
    %29 = vector.shape_cast %28 : vector<256xf32> to vector<1x256xf32>
    %cst_30 = arith.constant 1.250000e-01 : f32
    %30 = vector.broadcast %cst_30 : f32 to vector<1x256xf32>
    %31 = arith.mulf %29, %30 : vector<1x256xf32>
    %32 = arith.mulf %27, %27 : vector<8x256xf32>
    %cst_31 = arith.constant dense<0.000000e+00> : vector<256xf32>
    %33 = vector.multi_reduction <add>, %32, %cst_31 [0] : vector<8x256xf32> to vector<256xf32>
    %34 = vector.shape_cast %33 : vector<256xf32> to vector<1x256xf32>
    %cst_32 = arith.constant 1.250000e-01 : f32
    %35 = vector.broadcast %cst_32 : f32 to vector<1x256xf32>
    %36 = arith.mulf %34, %35 : vector<1x256xf32>
    %37 = arith.mulf %31, %31 : vector<1x256xf32>
    %38 = arith.subf %36, %37 : vector<1x256xf32>
    %cst_33 = arith.constant 0.000000e+00 : f32
    %39 = vector.broadcast %cst_33 : f32 to vector<1x256xf32>
    %40 = arith.maximumf %38, %39 : vector<1x256xf32>
    %cst_34 = arith.constant 9.99999974E-6 : f32
    %41 = vector.broadcast %cst_34 : f32 to vector<1x256xf32>
    %42 = arith.addf %40, %41 : vector<1x256xf32>
    %43 = math.rsqrt %42 : vector<1x256xf32>
    %44 = vector.broadcast %31 : vector<1x256xf32> to vector<8x256xf32>
    %45 = arith.subf %27, %44 : vector<8x256xf32>
    %46 = vector.broadcast %43 : vector<1x256xf32> to vector<8x256xf32>
    %47 = arith.mulf %45, %46 : vector<8x256xf32>
    %c0_35 = arith.constant 0 : index
    %c0_36 = arith.constant 0 : index
    %48 = vector.load %arg3[%c0_35, %c0_36] : memref<1x256xf32, #tpu.memory_space<vmem>>, vector<1x256xf32>
    %49 = vector.broadcast %48 : vector<1x256xf32> to vector<8x256xf32>
    %50 = arith.mulf %47, %49 : vector<8x256xf32>
    %c0_37 = arith.constant 0 : index
    %c0_38 = arith.constant 0 : index
    %51 = vector.load %arg4[%c0_37, %c0_38] : memref<1x256xf32, #tpu.memory_space<vmem>>, vector<1x256xf32>
    %52 = vector.broadcast %51 : vector<1x256xf32> to vector<8x256xf32>
    %53 = arith.addf %50, %52 : vector<8x256xf32>
    %cst_39 = arith.constant 0.000000e+00 : f32
    %54 = vector.broadcast %cst_39 : f32 to vector<8x256xf32>
    %55 = arith.maximumf %53, %54 : vector<8x256xf32>
    %c0_40 = arith.constant 0 : index
    %c0_41 = arith.constant 0 : index
    %c0_42 = arith.constant 0 : index
    %56 = vector.load %arg6[%c0_40, %c0_41, %c0_42] : memref<4x256x128xf32, #tpu.memory_space<vmem>>, vector<1x256x128xf32>
    %57 = vector.shape_cast %56 : vector<1x256x128xf32> to vector<256x128xf32>
    %cst_43 = arith.constant dense<0.000000e+00> : vector<8x128xf32>
    %58 = tpu.matmul %55, %57, %cst_43 {dimension_numbers = #tpu.dot_dimension_numbers<[1], [0], [0], [1], [0, 0, 1, 1], [], []>} : vector<8x256xf32>, vector<256x128xf32>, vector<8x128xf32> -> vector<8x128xf32>
    %c0_44 = arith.constant 0 : index
    %c0_45 = arith.constant 0 : index
    %c0_46 = arith.constant 0 : index
    %59 = vector.load %arg5[%c0_44, %c0_45, %c0_46] : memref<4x16x8xf32, #tpu.memory_space<vmem>>, vector<1x16x8xf32>
    %60 = vector.shape_cast %59 : vector<1x16x8xf32> to vector<16x8xf32>
    %cst_47 = arith.constant dense<0.000000e+00> : vector<16x128xf32>
    %61 = tpu.matmul %60, %58, %cst_47 {dimension_numbers = #tpu.dot_dimension_numbers<[1], [0], [0], [1], [0, 0, 1, 1], [], []>} : vector<16x8xf32>, vector<8x128xf32>, vector<16x128xf32> -> vector<16x128xf32>
    %c1_48 = arith.constant 1 : index
    %c0_49 = arith.constant 0 : index
    %c0_50 = arith.constant 0 : index
    %62 = vector.load %arg6[%c1_48, %c0_49, %c0_50] : memref<4x256x128xf32, #tpu.memory_space<vmem>>, vector<1x256x128xf32>
    %63 = vector.shape_cast %62 : vector<1x256x128xf32> to vector<256x128xf32>
    %cst_51 = arith.constant dense<0.000000e+00> : vector<8x128xf32>
    %64 = tpu.matmul %55, %63, %cst_51 {dimension_numbers = #tpu.dot_dimension_numbers<[1], [0], [0], [1], [0, 0, 1, 1], [], []>} : vector<8x256xf32>, vector<256x128xf32>, vector<8x128xf32> -> vector<8x128xf32>
    %c1_52 = arith.constant 1 : index
    %c0_53 = arith.constant 0 : index
    %c0_54 = arith.constant 0 : index
    %65 = vector.load %arg5[%c1_52, %c0_53, %c0_54] : memref<4x16x8xf32, #tpu.memory_space<vmem>>, vector<1x16x8xf32>
    %66 = vector.shape_cast %65 : vector<1x16x8xf32> to vector<16x8xf32>
    %cst_55 = arith.constant dense<0.000000e+00> : vector<16x128xf32>
    %67 = tpu.matmul %66, %64, %cst_55 {dimension_numbers = #tpu.dot_dimension_numbers<[1], [0], [0], [1], [0, 0, 1, 1], [], []>} : vector<16x8xf32>, vector<8x128xf32>, vector<16x128xf32> -> vector<16x128xf32>
    %68 = arith.addf %61, %67 : vector<16x128xf32>
    %c2_56 = arith.constant 2 : index
    %c0_57 = arith.constant 0 : index
    %c0_58 = arith.constant 0 : index
    %69 = vector.load %arg6[%c2_56, %c0_57, %c0_58] : memref<4x256x128xf32, #tpu.memory_space<vmem>>, vector<1x256x128xf32>
    %70 = vector.shape_cast %69 : vector<1x256x128xf32> to vector<256x128xf32>
    %cst_59 = arith.constant dense<0.000000e+00> : vector<8x128xf32>
    %71 = tpu.matmul %55, %70, %cst_59 {dimension_numbers = #tpu.dot_dimension_numbers<[1], [0], [0], [1], [0, 0, 1, 1], [], []>} : vector<8x256xf32>, vector<256x128xf32>, vector<8x128xf32> -> vector<8x128xf32>
    %c2_60 = arith.constant 2 : index
    %c0_61 = arith.constant 0 : index
    %c0_62 = arith.constant 0 : index
    %72 = vector.load %arg5[%c2_60, %c0_61, %c0_62] : memref<4x16x8xf32, #tpu.memory_space<vmem>>, vector<1x16x8xf32>
    %73 = vector.shape_cast %72 : vector<1x16x8xf32> to vector<16x8xf32>
    %cst_63 = arith.constant dense<0.000000e+00> : vector<16x128xf32>
    %74 = tpu.matmul %73, %71, %cst_63 {dimension_numbers = #tpu.dot_dimension_numbers<[1], [0], [0], [1], [0, 0, 1, 1], [], []>} : vector<16x8xf32>, vector<8x128xf32>, vector<16x128xf32> -> vector<16x128xf32>
    %75 = arith.addf %68, %74 : vector<16x128xf32>
    %c3_64 = arith.constant 3 : index
    %c0_65 = arith.constant 0 : index
    %c0_66 = arith.constant 0 : index
    %76 = vector.load %arg6[%c3_64, %c0_65, %c0_66] : memref<4x256x128xf32, #tpu.memory_space<vmem>>, vector<1x256x128xf32>
    %77 = vector.shape_cast %76 : vector<1x256x128xf32> to vector<256x128xf32>
    %cst_67 = arith.constant dense<0.000000e+00> : vector<8x128xf32>
    %78 = tpu.matmul %55, %77, %cst_67 {dimension_numbers = #tpu.dot_dimension_numbers<[1], [0], [0], [1], [0, 0, 1, 1], [], []>} : vector<8x256xf32>, vector<256x128xf32>, vector<8x128xf32> -> vector<8x128xf32>
    %c3_68 = arith.constant 3 : index
    %c0_69 = arith.constant 0 : index
    %c0_70 = arith.constant 0 : index
    %79 = vector.load %arg5[%c3_68, %c0_69, %c0_70] : memref<4x16x8xf32, #tpu.memory_space<vmem>>, vector<1x16x8xf32>
    %80 = vector.shape_cast %79 : vector<1x16x8xf32> to vector<16x8xf32>
    %cst_71 = arith.constant dense<0.000000e+00> : vector<16x128xf32>
    %81 = tpu.matmul %80, %78, %cst_71 {dimension_numbers = #tpu.dot_dimension_numbers<[1], [0], [0], [1], [0, 0, 1, 1], [], []>} : vector<16x8xf32>, vector<8x128xf32>, vector<16x128xf32> -> vector<16x128xf32>
    %82 = arith.addf %75, %81 : vector<16x128xf32>
    %cst_72 = arith.constant dense<0.000000e+00> : vector<128xf32>
    %83 = vector.multi_reduction <add>, %82, %cst_72 [0] : vector<16x128xf32> to vector<128xf32>
    %84 = vector.shape_cast %83 : vector<128xf32> to vector<1x128xf32>
    %cst_73 = arith.constant 6.250000e-02 : f32
    %85 = vector.broadcast %cst_73 : f32 to vector<1x128xf32>
    %86 = arith.mulf %84, %85 : vector<1x128xf32>
    %87 = arith.mulf %82, %82 : vector<16x128xf32>
    %cst_74 = arith.constant dense<0.000000e+00> : vector<128xf32>
    %88 = vector.multi_reduction <add>, %87, %cst_74 [0] : vector<16x128xf32> to vector<128xf32>
    %89 = vector.shape_cast %88 : vector<128xf32> to vector<1x128xf32>
    %cst_75 = arith.constant 6.250000e-02 : f32
    %90 = vector.broadcast %cst_75 : f32 to vector<1x128xf32>
    %91 = arith.mulf %89, %90 : vector<1x128xf32>
    %92 = arith.mulf %86, %86 : vector<1x128xf32>
    %93 = arith.subf %91, %92 : vector<1x128xf32>
    %cst_76 = arith.constant 0.000000e+00 : f32
    %94 = vector.broadcast %cst_76 : f32 to vector<1x128xf32>
    %95 = arith.maximumf %93, %94 : vector<1x128xf32>
    %cst_77 = arith.constant 9.99999974E-6 : f32
    %96 = vector.broadcast %cst_77 : f32 to vector<1x128xf32>
    %97 = arith.addf %95, %96 : vector<1x128xf32>
    %98 = math.rsqrt %97 : vector<1x128xf32>
    %99 = vector.broadcast %86 : vector<1x128xf32> to vector<16x128xf32>
    %100 = arith.subf %82, %99 : vector<16x128xf32>
    %101 = vector.broadcast %98 : vector<1x128xf32> to vector<16x128xf32>
    %102 = arith.mulf %100, %101 : vector<16x128xf32>
    %c0_78 = arith.constant 0 : index
    %c0_79 = arith.constant 0 : index
    %103 = vector.load %arg7[%c0_78, %c0_79] : memref<1x128xf32, #tpu.memory_space<vmem>>, vector<1x128xf32>
    %104 = vector.broadcast %103 : vector<1x128xf32> to vector<16x128xf32>
    %105 = arith.mulf %102, %104 : vector<16x128xf32>
    %c0_80 = arith.constant 0 : index
    %c0_81 = arith.constant 0 : index
    %106 = vector.load %arg8[%c0_80, %c0_81] : memref<1x128xf32, #tpu.memory_space<vmem>>, vector<1x128xf32>
    %107 = vector.broadcast %106 : vector<1x128xf32> to vector<16x128xf32>
    %108 = arith.addf %105, %107 : vector<16x128xf32>
    %cst_82 = arith.constant 0.000000e+00 : f32
    %109 = vector.broadcast %cst_82 : f32 to vector<16x128xf32>
    %110 = arith.maximumf %108, %109 : vector<16x128xf32>
    %c0_83 = arith.constant 0 : index
    %c0_84 = arith.constant 0 : index
    %c0_85 = arith.constant 0 : index
    %111 = vector.load %arg10[%c0_83, %c0_84, %c0_85] : memref<4x128x128xf32, #tpu.memory_space<vmem>>, vector<1x128x128xf32>
    %112 = vector.shape_cast %111 : vector<1x128x128xf32> to vector<128x128xf32>
    %cst_86 = arith.constant dense<0.000000e+00> : vector<16x128xf32>
    %113 = tpu.matmul %110, %112, %cst_86 {dimension_numbers = #tpu.dot_dimension_numbers<[1], [0], [0], [1], [0, 0, 1, 1], [], []>} : vector<16x128xf32>, vector<128x128xf32>, vector<16x128xf32> -> vector<16x128xf32>
    %c0_87 = arith.constant 0 : index
    %c0_88 = arith.constant 0 : index
    %c0_89 = arith.constant 0 : index
    %114 = vector.load %arg9[%c0_87, %c0_88, %c0_89] : memref<4x32x16xf32, #tpu.memory_space<vmem>>, vector<1x32x16xf32>
    %115 = vector.shape_cast %114 : vector<1x32x16xf32> to vector<32x16xf32>
    %cst_90 = arith.constant dense<0.000000e+00> : vector<32x128xf32>
    %116 = tpu.matmul %115, %113, %cst_90 {dimension_numbers = #tpu.dot_dimension_numbers<[1], [0], [0], [1], [0, 0, 1, 1], [], []>} : vector<32x16xf32>, vector<16x128xf32>, vector<32x128xf32> -> vector<32x128xf32>
    %c1_91 = arith.constant 1 : index
    %c0_92 = arith.constant 0 : index
    %c0_93 = arith.constant 0 : index
    %117 = vector.load %arg10[%c1_91, %c0_92, %c0_93] : memref<4x128x128xf32, #tpu.memory_space<vmem>>, vector<1x128x128xf32>
    %118 = vector.shape_cast %117 : vector<1x128x128xf32> to vector<128x128xf32>
    %cst_94 = arith.constant dense<0.000000e+00> : vector<16x128xf32>
    %119 = tpu.matmul %110, %118, %cst_94 {dimension_numbers = #tpu.dot_dimension_numbers<[1], [0], [0], [1], [0, 0, 1, 1], [], []>} : vector<16x128xf32>, vector<128x128xf32>, vector<16x128xf32> -> vector<16x128xf32>
    %c1_95 = arith.constant 1 : index
    %c0_96 = arith.constant 0 : index
    %c0_97 = arith.constant 0 : index
    %120 = vector.load %arg9[%c1_95, %c0_96, %c0_97] : memref<4x32x16xf32, #tpu.memory_space<vmem>>, vector<1x32x16xf32>
    %121 = vector.shape_cast %120 : vector<1x32x16xf32> to vector<32x16xf32>
    %cst_98 = arith.constant dense<0.000000e+00> : vector<32x128xf32>
    %122 = tpu.matmul %121, %119, %cst_98 {dimension_numbers = #tpu.dot_dimension_numbers<[1], [0], [0], [1], [0, 0, 1, 1], [], []>} : vector<32x16xf32>, vector<16x128xf32>, vector<32x128xf32> -> vector<32x128xf32>
    %123 = arith.addf %116, %122 : vector<32x128xf32>
    %c2_99 = arith.constant 2 : index
    %c0_100 = arith.constant 0 : index
    %c0_101 = arith.constant 0 : index
    %124 = vector.load %arg10[%c2_99, %c0_100, %c0_101] : memref<4x128x128xf32, #tpu.memory_space<vmem>>, vector<1x128x128xf32>
    %125 = vector.shape_cast %124 : vector<1x128x128xf32> to vector<128x128xf32>
    %cst_102 = arith.constant dense<0.000000e+00> : vector<16x128xf32>
    %126 = tpu.matmul %110, %125, %cst_102 {dimension_numbers = #tpu.dot_dimension_numbers<[1], [0], [0], [1], [0, 0, 1, 1], [], []>} : vector<16x128xf32>, vector<128x128xf32>, vector<16x128xf32> -> vector<16x128xf32>
    %c2_103 = arith.constant 2 : index
    %c0_104 = arith.constant 0 : index
    %c0_105 = arith.constant 0 : index
    %127 = vector.load %arg9[%c2_103, %c0_104, %c0_105] : memref<4x32x16xf32, #tpu.memory_space<vmem>>, vector<1x32x16xf32>
    %128 = vector.shape_cast %127 : vector<1x32x16xf32> to vector<32x16xf32>
    %cst_106 = arith.constant dense<0.000000e+00> : vector<32x128xf32>
    %129 = tpu.matmul %128, %126, %cst_106 {dimension_numbers = #tpu.dot_dimension_numbers<[1], [0], [0], [1], [0, 0, 1, 1], [], []>} : vector<32x16xf32>, vector<16x128xf32>, vector<32x128xf32> -> vector<32x128xf32>
    %130 = arith.addf %123, %129 : vector<32x128xf32>
    %c3_107 = arith.constant 3 : index
    %c0_108 = arith.constant 0 : index
    %c0_109 = arith.constant 0 : index
    %131 = vector.load %arg10[%c3_107, %c0_108, %c0_109] : memref<4x128x128xf32, #tpu.memory_space<vmem>>, vector<1x128x128xf32>
    %132 = vector.shape_cast %131 : vector<1x128x128xf32> to vector<128x128xf32>
    %cst_110 = arith.constant dense<0.000000e+00> : vector<16x128xf32>
    %133 = tpu.matmul %110, %132, %cst_110 {dimension_numbers = #tpu.dot_dimension_numbers<[1], [0], [0], [1], [0, 0, 1, 1], [], []>} : vector<16x128xf32>, vector<128x128xf32>, vector<16x128xf32> -> vector<16x128xf32>
    %c3_111 = arith.constant 3 : index
    %c0_112 = arith.constant 0 : index
    %c0_113 = arith.constant 0 : index
    %134 = vector.load %arg9[%c3_111, %c0_112, %c0_113] : memref<4x32x16xf32, #tpu.memory_space<vmem>>, vector<1x32x16xf32>
    %135 = vector.shape_cast %134 : vector<1x32x16xf32> to vector<32x16xf32>
    %cst_114 = arith.constant dense<0.000000e+00> : vector<32x128xf32>
    %136 = tpu.matmul %135, %133, %cst_114 {dimension_numbers = #tpu.dot_dimension_numbers<[1], [0], [0], [1], [0, 0, 1, 1], [], []>} : vector<32x16xf32>, vector<16x128xf32>, vector<32x128xf32> -> vector<32x128xf32>
    %137 = arith.addf %130, %136 : vector<32x128xf32>
    %cst_115 = arith.constant dense<0.000000e+00> : vector<128xf32>
    %138 = vector.multi_reduction <add>, %137, %cst_115 [0] : vector<32x128xf32> to vector<128xf32>
    %139 = vector.shape_cast %138 : vector<128xf32> to vector<1x128xf32>
    %cst_116 = arith.constant 3.125000e-02 : f32
    %140 = vector.broadcast %cst_116 : f32 to vector<1x128xf32>
    %141 = arith.mulf %139, %140 : vector<1x128xf32>
    %142 = arith.mulf %137, %137 : vector<32x128xf32>
    %cst_117 = arith.constant dense<0.000000e+00> : vector<128xf32>
    %143 = vector.multi_reduction <add>, %142, %cst_117 [0] : vector<32x128xf32> to vector<128xf32>
    %144 = vector.shape_cast %143 : vector<128xf32> to vector<1x128xf32>
    %cst_118 = arith.constant 3.125000e-02 : f32
    %145 = vector.broadcast %cst_118 : f32 to vector<1x128xf32>
    %146 = arith.mulf %144, %145 : vector<1x128xf32>
    %147 = arith.mulf %141, %141 : vector<1x128xf32>
    %148 = arith.subf %146, %147 : vector<1x128xf32>
    %cst_119 = arith.constant 0.000000e+00 : f32
    %149 = vector.broadcast %cst_119 : f32 to vector<1x128xf32>
    %150 = arith.maximumf %148, %149 : vector<1x128xf32>
    %cst_120 = arith.constant 9.99999974E-6 : f32
    %151 = vector.broadcast %cst_120 : f32 to vector<1x128xf32>
    %152 = arith.addf %150, %151 : vector<1x128xf32>
    %153 = math.rsqrt %152 : vector<1x128xf32>
    %154 = vector.broadcast %141 : vector<1x128xf32> to vector<32x128xf32>
    %155 = arith.subf %137, %154 : vector<32x128xf32>
    %156 = vector.broadcast %153 : vector<1x128xf32> to vector<32x128xf32>
    %157 = arith.mulf %155, %156 : vector<32x128xf32>
    %c0_121 = arith.constant 0 : index
    %c0_122 = arith.constant 0 : index
    %158 = vector.load %arg11[%c0_121, %c0_122] : memref<1x128xf32, #tpu.memory_space<vmem>>, vector<1x128xf32>
    %159 = vector.broadcast %158 : vector<1x128xf32> to vector<32x128xf32>
    %160 = arith.mulf %157, %159 : vector<32x128xf32>
    %c0_123 = arith.constant 0 : index
    %c0_124 = arith.constant 0 : index
    %161 = vector.load %arg12[%c0_123, %c0_124] : memref<1x128xf32, #tpu.memory_space<vmem>>, vector<1x128xf32>
    %162 = vector.broadcast %161 : vector<1x128xf32> to vector<32x128xf32>
    %163 = arith.addf %160, %162 : vector<32x128xf32>
    %cst_125 = arith.constant 0.000000e+00 : f32
    %164 = vector.broadcast %cst_125 : f32 to vector<32x128xf32>
    %165 = arith.maximumf %163, %164 : vector<32x128xf32>
    %c0_126 = arith.constant 0 : index
    %c0_127 = arith.constant 0 : index
    %c0_128 = arith.constant 0 : index
    %166 = vector.load %arg14[%c0_126, %c0_127, %c0_128] : memref<4x128x128xf32, #tpu.memory_space<vmem>>, vector<1x128x128xf32>
    %167 = vector.shape_cast %166 : vector<1x128x128xf32> to vector<128x128xf32>
    %cst_129 = arith.constant dense<0.000000e+00> : vector<32x128xf32>
    %168 = tpu.matmul %165, %167, %cst_129 {dimension_numbers = #tpu.dot_dimension_numbers<[1], [0], [0], [1], [0, 0, 1, 1], [], []>} : vector<32x128xf32>, vector<128x128xf32>, vector<32x128xf32> -> vector<32x128xf32>
    %c0_130 = arith.constant 0 : index
    %c0_131 = arith.constant 0 : index
    %c0_132 = arith.constant 0 : index
    %169 = vector.load %arg13[%c0_130, %c0_131, %c0_132] : memref<4x64x32xf32, #tpu.memory_space<vmem>>, vector<1x64x32xf32>
    %170 = vector.shape_cast %169 : vector<1x64x32xf32> to vector<64x32xf32>
    %cst_133 = arith.constant dense<0.000000e+00> : vector<64x128xf32>
    %171 = tpu.matmul %170, %168, %cst_133 {dimension_numbers = #tpu.dot_dimension_numbers<[1], [0], [0], [1], [0, 0, 1, 1], [], []>} : vector<64x32xf32>, vector<32x128xf32>, vector<64x128xf32> -> vector<64x128xf32>
    %c1_134 = arith.constant 1 : index
    %c0_135 = arith.constant 0 : index
    %c0_136 = arith.constant 0 : index
    %172 = vector.load %arg14[%c1_134, %c0_135, %c0_136] : memref<4x128x128xf32, #tpu.memory_space<vmem>>, vector<1x128x128xf32>
    %173 = vector.shape_cast %172 : vector<1x128x128xf32> to vector<128x128xf32>
    %cst_137 = arith.constant dense<0.000000e+00> : vector<32x128xf32>
    %174 = tpu.matmul %165, %173, %cst_137 {dimension_numbers = #tpu.dot_dimension_numbers<[1], [0], [0], [1], [0, 0, 1, 1], [], []>} : vector<32x128xf32>, vector<128x128xf32>, vector<32x128xf32> -> vector<32x128xf32>
    %c1_138 = arith.constant 1 : index
    %c0_139 = arith.constant 0 : index
    %c0_140 = arith.constant 0 : index
    %175 = vector.load %arg13[%c1_138, %c0_139, %c0_140] : memref<4x64x32xf32, #tpu.memory_space<vmem>>, vector<1x64x32xf32>
    %176 = vector.shape_cast %175 : vector<1x64x32xf32> to vector<64x32xf32>
    %cst_141 = arith.constant dense<0.000000e+00> : vector<64x128xf32>
    %177 = tpu.matmul %176, %174, %cst_141 {dimension_numbers = #tpu.dot_dimension_numbers<[1], [0], [0], [1], [0, 0, 1, 1], [], []>} : vector<64x32xf32>, vector<32x128xf32>, vector<64x128xf32> -> vector<64x128xf32>
    %178 = arith.addf %171, %177 : vector<64x128xf32>
    %c2_142 = arith.constant 2 : index
    %c0_143 = arith.constant 0 : index
    %c0_144 = arith.constant 0 : index
    %179 = vector.load %arg14[%c2_142, %c0_143, %c0_144] : memref<4x128x128xf32, #tpu.memory_space<vmem>>, vector<1x128x128xf32>
    %180 = vector.shape_cast %179 : vector<1x128x128xf32> to vector<128x128xf32>
    %cst_145 = arith.constant dense<0.000000e+00> : vector<32x128xf32>
    %181 = tpu.matmul %165, %180, %cst_145 {dimension_numbers = #tpu.dot_dimension_numbers<[1], [0], [0], [1], [0, 0, 1, 1], [], []>} : vector<32x128xf32>, vector<128x128xf32>, vector<32x128xf32> -> vector<32x128xf32>
    %c2_146 = arith.constant 2 : index
    %c0_147 = arith.constant 0 : index
    %c0_148 = arith.constant 0 : index
    %182 = vector.load %arg13[%c2_146, %c0_147, %c0_148] : memref<4x64x32xf32, #tpu.memory_space<vmem>>, vector<1x64x32xf32>
    %183 = vector.shape_cast %182 : vector<1x64x32xf32> to vector<64x32xf32>
    %cst_149 = arith.constant dense<0.000000e+00> : vector<64x128xf32>
    %184 = tpu.matmul %183, %181, %cst_149 {dimension_numbers = #tpu.dot_dimension_numbers<[1], [0], [0], [1], [0, 0, 1, 1], [], []>} : vector<64x32xf32>, vector<32x128xf32>, vector<64x128xf32> -> vector<64x128xf32>
    %185 = arith.addf %178, %184 : vector<64x128xf32>
    %c3_150 = arith.constant 3 : index
    %c0_151 = arith.constant 0 : index
    %c0_152 = arith.constant 0 : index
    %186 = vector.load %arg14[%c3_150, %c0_151, %c0_152] : memref<4x128x128xf32, #tpu.memory_space<vmem>>, vector<1x128x128xf32>
    %187 = vector.shape_cast %186 : vector<1x128x128xf32> to vector<128x128xf32>
    %cst_153 = arith.constant dense<0.000000e+00> : vector<32x128xf32>
    %188 = tpu.matmul %165, %187, %cst_153 {dimension_numbers = #tpu.dot_dimension_numbers<[1], [0], [0], [1], [0, 0, 1, 1], [], []>} : vector<32x128xf32>, vector<128x128xf32>, vector<32x128xf32> -> vector<32x128xf32>
    %c3_154 = arith.constant 3 : index
    %c0_155 = arith.constant 0 : index
    %c0_156 = arith.constant 0 : index
    %189 = vector.load %arg13[%c3_154, %c0_155, %c0_156] : memref<4x64x32xf32, #tpu.memory_space<vmem>>, vector<1x64x32xf32>
    %190 = vector.shape_cast %189 : vector<1x64x32xf32> to vector<64x32xf32>
    %cst_157 = arith.constant dense<0.000000e+00> : vector<64x128xf32>
    %191 = tpu.matmul %190, %188, %cst_157 {dimension_numbers = #tpu.dot_dimension_numbers<[1], [0], [0], [1], [0, 0, 1, 1], [], []>} : vector<64x32xf32>, vector<32x128xf32>, vector<64x128xf32> -> vector<64x128xf32>
    %192 = arith.addf %185, %191 : vector<64x128xf32>
    %193 = math.tanh %192 : vector<64x128xf32>
    %c0_158 = arith.constant 0 : index
    %c0_159 = arith.constant 0 : index
    %194 = vector.load %arg15[%c0_158, %c0_159] : memref<64x128xf32, #tpu.memory_space<vmem>>, vector<64x128xf32>
    tpu.vector_store %arg15[%c0_158, %c0_159], %193 {strides = array<i32>} : memref<64x128xf32, #tpu.memory_space<vmem>>, vector<64x128xf32>,
    return
  }
}

</mosaic_0001>

<bundles_post_ra>
// kernel: squeeze.1
= control target key start
LH: loop header
LB: loop body
LE: loop exit
PB: predicated region body
PF: predicated region fallthrough
CT: control target
= control target key end

     0   :  { %s77_s0 = inlined_call_operand.vmem [shape: f32[64], index: 0, kind: input, shape index: {}]   ;;  %s78_s1 = inlined_call_operand.hbm [shape: f32[2,1,32], index: 1, kind: output, shape index: {}]  }
   0x1   :  { %v6_v0 = vld [vmem:[%s77_s0] sm:$0x1] }
   0x2   :  { %2 = vsyncpa [#allocation1], 0  ;;  %7 = vst [vmem:[#allocation3] sm:$0x1] %v6_v0  ;;  %vm9_vm0 = vcmask 261120   ;;  %s59_s0 = smov 96  }
   0x3   :  { %s60_s8 = smov [#allocation0]  }
   0x4   :  { %s29_s9 = sshll.u32 %s60_s8, 4  ;;  %s30_s9 = int_to_ptr.vmem [resolvable:$true] %s29_s9 }
   0x5   :  { %s37_s10 = scalar_lea.vmem %s30_s9, 32  ;;  %p42_p1 = scmp.lt.s32.totalorder %s30_s9, %s30_s9 }
   0x6   :  { %p38_p0 = scmp.ne.s32.totalorder %s30_s9, %s37_s10  ;;  %p43_p2 = scmp.lt.s32.totalorder %s37_s10, %s37_s10 }
   0x8   :  { %p44_p3 = por %p43_p2, %p42_p1 }
   0x9   :  { %v11_v1 = vld [vmem:[#allocation3] sm:$0x1]  }
   0xa   :  { %v8_v2 = vld [vmem:[#allocation3] sm:$0x1]   ;;  %12 = vrot.lane.b32.xlu0 %v11_v1, %s59_s0  ;;  %p45_p4 = pnand %p44_p3, %p38_p0 }
   0xb   :  { %10 = vst.msk [vmem:[#allocation2] sm:$0x1] %vm9_vm0, %v8_v2  }
  0x7c   :  { %v13_v3 = vpop.permute.xlu0 %12  }
  0x7d   :  { %16 = vst.msk [vmem:[#allocation2 + $0x1] sm:$0x1] %vm9_vm0, %v13_v3  }
  0x84   :  { %v21_v4 = vld [vmem:[#allocation2] sm:$0x3] }
  0x85   :  { %24 = vst [vmem:[#allocation0] sm:$0x3] %v21_v4 }
  0x86   :  { %48 = shalt.err (!%p45_p4)
}
  0x87   :  { %32 = dma.vmem_to_hbm [thread:$0]  %s30_s9, 32, %s78_s1, [#allocation1]  }
  0x88   :  { %57 = dma.done.wait [#allocation1], 32  }
  0x89   :  { %58 = vsyncadd [#allocation1], 4294967264 }
  0x8a   :  { %34 = vsyncpa [#allocation1], 1 }

// kernel: forward.1
= control target key start
LH: loop header
LB: loop body
LE: loop exit
PB: predicated region body
PF: predicated region fallthrough
CT: control target
= control target key end

     0   :  { %20 = vsyncpa [#allocation3], 0  ;;  %s5098_s0 = inlined_call_operand.vmem [shape: f32[2,128], index: 0, kind: input, shape index: {}]   ;;  %s5099_s1 = inlined_call_operand.hbm [shape: f32[4,8,2], index: 1, kind: input, shape index: {}]   ;;  %s5100_s2 = inlined_call_operand.hbm [shape: f32[4,128,256], index: 2, kind: input, shape index: {}]   ;;  %s5101_s3 = inlined_call_operand.vmem [shape: f32[1,256], index: 3, kind: input, shape index: {}]   ;;  %s5102_s4 = inlined_call_operand.vmem [shape: f32[1,256], index: 4, kind: input, shape index: {}]   ;;  %s5103_s5 = inlined_call_operand.hbm [shape: f32[4,16,8], index: 5, kind: input, shape index: {}]   ;;  %s5104_s6 = inlined_call_operand.hbm [shape: f32[4,256,128], index: 6, kind: input, shape index: {}]   ;;  %s5105_s7 = inlined_call_operand.vmem [shape: f32[1,128], index: 7, kind: input, shape index: {}]   ;;  %s5106_s8 = inlined_call_operand.vmem [shape: f32[1,128], index: 8, kind: input, shape index: {}, may-alias: {8,12}]   ;;  %s5107_s9 = inlined_call_operand.hbm [shape: f32[4,32,16], index: 9, kind: input, shape index: {}]   ;;  %s5108_s10 = inlined_call_operand.hbm [shape: f32[4,128,128], index: 10, kind: input, shape index: {}]   ;;  %s5109_s11 = inlined_call_operand.vmem [shape: f32[1,128], index: 11, kind: input, shape index: {}]   ;;  %s5110_s12 = inlined_call_operand.vmem [shape: f32[1,128], index: 12, kind: input, shape index: {}, may-alias: {8,12}]   ;;  %s5111_s13 = inlined_call_operand.hbm [shape: f32[4,64,32], index: 13, kind: input, shape index: {}]   ;;  %s5112_s14 = inlined_call_operand.hbm [shape: f32[4,128,128], index: 14, kind: input, shape index: {}]   ;;  %s5113_s15 = inlined_call_operand.vmem [shape: f32[64,128], index: 15, kind: output, shape index: {}]  }
   0x1   :  { %21 = vsyncpa [#allocation5], 0 }
   0x2   :  { %22 = vsyncpa [#allocation8], 0 }
   0x3   :  { %23 = vsyncpa [#allocation11], 0 }
   0x4   :  { %24 = vsyncpa [#allocation14], 0  ;;  %s4713_s18 = smov [#allocation4]  }
   0x5   :  { %s44_s19 = sshll.u32 %s4713_s18, 4  ;;  %s45_s19 = int_to_ptr.vmem [resolvable:$true] %s44_s19 }
   0x6   :  { %s4551_s20 = scalar_lea.vmem %s45_s19, 16384  ;;  %p4556_p1 = scmp.lt.s32.totalorder %s45_s19, %s45_s19 }
   0x7   :  { %p4552_p0 = scmp.ne.s32.totalorder %s45_s19, %s4551_s20  ;;  %p4557_p2 = scmp.lt.s32.totalorder %s4551_s20, %s4551_s20 }
   0x9   :  { %p4558_p3 = por %p4557_p2, %p4556_p1 }
   0xb   :  { %p4559_p4 = pnand %p4558_p3, %p4552_p0 }
   0xd   :  { %4562 = shalt.err (!%p4559_p4)
}
   0xe   :  { %s4714_s21 = smov 256   ;;  %s4715_s22 = smov 16  }
   0xf   :  { %50 = dma.hbm_to_vmem [thread:$0]  %s5100_s2, 16384, %s45_s19, [#allocation5], %s4714_s21, %s4714_s21, %s4715_s22  }
  0x10   :  { %s4716_s25 = smov [#allocation7]   ;;  %s4717_s27 = smov [#allocation10]  }
  0x11   :  { %s72_s26 = sshll.u32 %s4716_s25, 4  ;;  %s100_s28 = sshll.u32 %s4717_s27, 4  ;;  %s73_s26 = int_to_ptr.vmem [resolvable:$true] %s72_s26  ;;  %s101_s28 = int_to_ptr.vmem [resolvable:$true] %s100_s28 }
  0x12   :  { %s4571_s29 = scalar_lea.vmem %s73_s26, 16384  ;;  %p4576_p6 = scmp.lt.s32.totalorder %s73_s26, %s73_s26 }
  0x13   :  { %p4572_p5 = scmp.ne.s32.totalorder %s73_s26, %s4571_s29  ;;  %p4577_p7 = scmp.lt.s32.totalorder %s4571_s29, %s4571_s29 }
  0x15   :  { %p4578_p8 = por %p4577_p7, %p4576_p6 }
  0x17   :  { %p4579_p9 = pnand %p4578_p8, %p4572_p5 }
  0x19   :  { %4582 = shalt.err (!%p4579_p9)
}
  0x1a   :  { %s4718_s30 = smov 128   ;;  %s4719_s16 = smov 8  }
  0x1b   :  { %78 = dma.hbm_to_vmem [thread:$0]  %s5104_s6, 16384, %s73_s26, [#allocation8], %s4718_s30, %s4718_s30, %s4719_s16  }
  0x1c   :  { %s4591_s2 = scalar_lea.vmem %s101_s28, 8192  ;;  %p4596_p11 = scmp.lt.s32.totalorder %s101_s28, %s101_s28 }
  0x1d   :  { %p4592_p10 = scmp.ne.s32.totalorder %s101_s28, %s4591_s2  ;;  %p4597_p12 = scmp.lt.s32.totalorder %s4591_s2, %s4591_s2 }
  0x1f   :  { %p4598_p13 = por %p4597_p12, %p4596_p11 }
  0x21   :  { %p4599_p0 = pnand %p4598_p13, %p4592_p10 }
  0x23   :  { %4602 = shalt.err (!%p4599_p0)
}
  0x24   :  { %106 = dma.hbm_to_vmem [thread:$0]  %s5108_s10, 8192, %s101_s28, [#allocation11], %s4718_s30, %s4718_s30, %s4719_s16  }
  0x25   :  { %s4720_s21 = smov [#allocation2]   ;;  %s4721_s23 = smov [#allocation6]  }
  0x26   :  { %s32_s22 = sshll.u32 %s4720_s21, 4  ;;  %s60_s6 = sshll.u32 %s4721_s23, 4  ;;  %s33_s22 = int_to_ptr.vmem [resolvable:$true] %s32_s22  ;;  %s61_s6 = int_to_ptr.vmem [resolvable:$true] %s60_s6 }
  0x27   :  { %s4611_s24 = scalar_lea.vmem %s33_s22, 512  ;;  %p4616_p2 = scmp.lt.s32.totalorder %s33_s22, %s33_s22 }
  0x28   :  { %p4612_p1 = scmp.ne.s32.totalorder %s33_s22, %s4611_s24  ;;  %p4617_p3 = scmp.lt.s32.totalorder %s4611_s24, %s4611_s24 }
  0x2a   :  { %p4618_p4 = por %p4617_p3, %p4616_p2 }
  0x2c   :  { %p4619_p5 = pnand %p4618_p4, %p4612_p1 }
  0x2e   :  { %4622 = shalt.err (!%p4619_p5)
}
  0x2f   :  { %38 = dma.hbm_to_vmem [thread:$0]  %s5099_s1, 512, %s33_s22, [#allocation3], %s4718_s30, %s4718_s30, %s4719_s16  }
  0x30   :  { %s4631_s10 = scalar_lea.vmem %s61_s6, 1024  ;;  %p4636_p7 = scmp.lt.s32.totalorder %s61_s6, %s61_s6 }
  0x31   :  { %p4632_p6 = scmp.ne.s32.totalorder %s61_s6, %s4631_s10  ;;  %p4637_p8 = scmp.lt.s32.totalorder %s4631_s10, %s4631_s10 }
  0x33   :  { %p4638_p9 = por %p4637_p8, %p4636_p7 }
  0x35   :  { %p4639_p10 = pnand %p4638_p9, %p4632_p6 }
  0x37   :  { %4642 = shalt.err (!%p4639_p10)
}
  0x38   :  { %66 = dma.hbm_to_vmem [thread:$0]  %s5103_s5, 1024, %s61_s6, [#allocation5], %s4718_s30, %s4718_s30, %s4719_s16  }
  0x39   :  { %s4722_s29 = smov [#allocation9]   ;;  %s4723_s18 = smov [#allocation12]  }
  0x3a   :  { %s88_s17 = sshll.u32 %s4722_s29, 4  ;;  %s116_s1 = sshll.u32 %s4723_s18, 4  ;;  %s89_s17 = int_to_ptr.vmem [resolvable:$true] %s88_s17  ;;  %s117_s1 = int_to_ptr.vmem [resolvable:$true] %s116_s1 }
  0x3b   :  { %s4651_s2 = scalar_lea.vmem %s89_s17, 2048  ;;  %p4656_p12 = scmp.lt.s32.totalorder %s89_s17, %s89_s17 }
  0x3c   :  { %p4652_p11 = scmp.ne.s32.totalorder %s89_s17, %s4651_s2  ;;  %p4657_p13 = scmp.lt.s32.totalorder %s4651_s2, %s4651_s2 }
  0x3e   :  { %p4658_p0 = por %p4657_p13, %p4656_p12 }
  0x40   :  { %p4659_p1 = pnand %p4658_p0, %p4652_p11 }
  0x42   :  { %4662 = shalt.err (!%p4659_p1)
}
  0x43   :  { %94 = dma.hbm_to_vmem [thread:$0]  %s5107_s9, 2048, %s89_s17, [#allocation8], %s4718_s30, %s4718_s30, %s4719_s16  }
  0x44   :  { %s4671_s5 = scalar_lea.vmem %s117_s1, 4096  ;;  %p4676_p3 = scmp.lt.s32.totalorder %s117_s1, %s117_s1 }
  0x45   :  { %p4672_p2 = scmp.ne.s32.totalorder %s117_s1, %s4671_s5  ;;  %p4677_p4 = scmp.lt.s32.totalorder %s4671_s5, %s4671_s5 }
  0x47   :  { %p4678_p5 = por %p4677_p4, %p4676_p3 }
  0x49   :  { %p4679_p6 = pnand %p4678_p5, %p4672_p2 }
  0x4b   :  { %4682 = shalt.err (!%p4679_p6)
}
  0x4c   :  { %122 = dma.hbm_to_vmem [thread:$0]  %s5111_s13, 4096, %s117_s1, [#allocation11], %s4718_s30, %s4718_s30, %s4719_s16  }
  0x4d   :  { %s4724_s23 = smov [#allocation13]  }
  0x4e   :  { %s128_s6 = sshll.u32 %s4724_s23, 4  ;;  %s129_s6 = int_to_ptr.vmem [resolvable:$true] %s128_s6 }
  0x4f   :  { %s4691_s24 = scalar_lea.vmem %s129_s6, 8192  ;;  %p4696_p8 = scmp.lt.s32.totalorder %s129_s6, %s129_s6 }
  0x50   :  { %p4692_p7 = scmp.ne.s32.totalorder %s129_s6, %s4691_s24  ;;  %p4697_p9 = scmp.lt.s32.totalorder %s4691_s24, %s4691_s24 }
  0x52   :  { %p4698_p10 = por %p4697_p9, %p4696_p8 }
  0x54   :  { %p4699_p11 = pnand %p4698_p10, %p4692_p7 }
  0x56   :  { %4702 = shalt.err (!%p4699_p11)
}
  0x57   :  { %134 = dma.hbm_to_vmem [thread:$0]  %s5112_s14, 8192, %s129_s6, [#allocation14], %s4718_s30, %s4718_s30, %s4719_s16  }
  0x58   :  { %4703 = dma.done.wait [#allocation3], 512  }
  0x59   :  { %4704 = vsyncadd [#allocation3], 4294966784 }
  0x5a   :  { %4705 = dma.done.wait [#allocation5], 17408  }
  0x5b   :  { %4706 = vsyncadd [#allocation5], 4294949888 }
  0x5c   :  { %4707 = dma.done.wait [#allocation8], 18432  }
  0x5d   :  { %4708 = vsyncadd [#allocation8], 4294948864 }
  0x5e   :  { %4709 = dma.done.wait [#allocation11], 12288  }
  0x5f   :  { %4710 = vsyncadd [#allocation11], 4294955008 }
  0x60   :  { %4711 = dma.done.wait [#allocation14], 8192  }
  0x61   :  { %4712 = vsyncadd [#allocation14], 4294959104  ;;  %v4725_v0 = vmov 0.0   ;;  %v191_v1 = vld [vmem:[#allocation4 + $0xf8] sm:$0xff]  ;;  %v190_v3 = vld [vmem:[#allocation4 + $0xf0] sm:$0xff]  ;;  %vm374_vm0 = vcmask 1041408  }
  0x62   :  { %256 = vmatprep.mubr.f32.mxu0 %v4725_v0  ;;  %361 = vmatprep.mubr.f32.mxu1 %v4725_v0  ;;  %v296_v2 = vld [vmem:[#allocation4 + $0x1f8] sm:$0xff]  ;;  %v295_v4 = vld [vmem:[#allocation4 + $0x1f0] sm:$0xff]  ;;  %v189_v5 = vld [vmem:[#allocation4 + $0xe8] sm:$0xff]  ;;  %vm370_vm1 = vcmask 15360   ;;  %vm1192_vm2 = vcmask 64512   ;;  %vm1972_vm3 = vcmask 130048  }
  0x63   :  { %192 = vmatprep.subr.mxu0 %v191_v1  ;;  %297 = vmatprep.subr.mxu1 %v296_v2  ;;  %v294_v6 = vld [vmem:[#allocation4 + $0x1e8] sm:$0xff]  ;;  %v188_v7 = vld [vmem:[#allocation4 + $0xe0] sm:$0xff]  ;;  %v187_v9 = vld [vmem:[#allocation4 + $0xd8] sm:$0xff]  ;;  %vm2846_vm4 = vcmask 261120  }
  0x64   :  { %193 = vmatpush1.msra.mxu0 %v190_v3  ;;  %298 = vmatpush1.msra.mxu1 %v295_v4  ;;  %v293_v8 = vld [vmem:[#allocation4 + $0x1e0] sm:$0xff]  ;;  %v292_v10 = vld [vmem:[#allocation4 + $0x1d8] sm:$0xff]  ;;  %v186_v11 = vld [vmem:[#allocation4 + $0xd0] sm:$0xff] }
  0x65   :  { %194 = vmatprep.subr.mxu0 %v189_v5  ;;  %299 = vmatprep.subr.mxu1 %v294_v6  ;;  %v291_v12 = vld [vmem:[#allocation4 + $0x1d0] sm:$0xff]  ;;  %v185_v13 = vld [vmem:[#allocation4 + $0xc8] sm:$0xff]  ;;  %v184_v15 = vld [vmem:[#allocation4 + $0xc0] sm:$0xff] }
  0x66   :  { %195 = vmatpush1.msra.mxu0 %v188_v7  ;;  %300 = vmatpush1.msra.mxu1 %v293_v8  ;;  %v290_v14 = vld [vmem:[#allocation4 + $0x1c8] sm:$0xff]  ;;  %v289_v16 = vld [vmem:[#allocation4 + $0x1c0] sm:$0xff]  ;;  %v183_v17 = vld [vmem:[#allocation4 + $0xb8] sm:$0xff] }
  0x67   :  { %196 = vmatprep.subr.mxu0 %v187_v9  ;;  %301 = vmatprep.subr.mxu1 %v292_v10  ;;  %v288_v18 = vld [vmem:[#allocation4 + $0x1b8] sm:$0xff]  ;;  %v182_v19 = vld [vmem:[#allocation4 + $0xb0] sm:$0xff]  ;;  %v181_v21 = vld [vmem:[#allocation4 + $0xa8] sm:$0xff] }
  0x68   :  { %197 = vmatpush1.msra.mxu0 %v186_v11  ;;  %302 = vmatpush1.msra.mxu1 %v291_v12  ;;  %v287_v20 = vld [vmem:[#allocation4 + $0x1b0] sm:$0xff]  ;;  %v286_v22 = vld [vmem:[#allocation4 + $0x1a8] sm:$0xff]  ;;  %v180_v23 = vld [vmem:[#allocation4 + $0xa0] sm:$0xff] }
  0x69   :  { %198 = vmatprep.subr.mxu0 %v185_v13  ;;  %303 = vmatprep.subr.mxu1 %v290_v14  ;;  %v285_v24 = vld [vmem:[#allocation4 + $0x1a0] sm:$0xff]  ;;  %v179_v25 = vld [vmem:[#allocation4 + $0x98] sm:$0xff]  ;;  %v178_v27 = vld [vmem:[#allocation4 + $0x90] sm:$0xff] }
  0x6a   :  { %199 = vmatpush1.msra.mxu0 %v184_v15  ;;  %304 = vmatpush1.msra.mxu1 %v289_v16  ;;  %v284_v26 = vld [vmem:[#allocation4 + $0x198] sm:$0xff]  ;;  %v283_v28 = vld [vmem:[#allocation4 + $0x190] sm:$0xff]  ;;  %v177_v29 = vld [vmem:[#allocation4 + $0x88] sm:$0xff] }
  0x6b   :  { %200 = vmatprep.subr.mxu0 %v183_v17  ;;  %305 = vmatprep.subr.mxu1 %v288_v18  ;;  %v282_v30 = vld [vmem:[#allocation4 + $0x188] sm:$0xff]  ;;  %v176_v31 = vld [vmem:[#allocation4 + $0x80] sm:$0xff]  ;;  %v175_v33 = vld [vmem:[#allocation4 + $0x78] sm:$0xff] }
  0x6c   :  { %201 = vmatpush1.msra.mxu0 %v182_v19  ;;  %306 = vmatpush1.msra.mxu1 %v287_v20  ;;  %v281_v32 = vld [vmem:[#allocation4 + $0x180] sm:$0xff]  ;;  %v280_v34 = vld [vmem:[#allocation4 + $0x178] sm:$0xff]  ;;  %v174_v35 = vld [vmem:[#allocation4 + $0x70] sm:$0xff] }
  0x6d   :  { %202 = vmatprep.subr.mxu0 %v181_v21  ;;  %307 = vmatprep.subr.mxu1 %v286_v22  ;;  %v279_v36 = vld [vmem:[#allocation4 + $0x170] sm:$0xff]  ;;  %v173_v37 = vld [vmem:[#allocation4 + $0x68] sm:$0xff]  ;;  %v172_v39 = vld [vmem:[#allocation4 + $0x60] sm:$0xff] }
  0x6e   :  { %203 = vmatpush1.msra.mxu0 %v180_v23  ;;  %308 = vmatpush1.msra.mxu1 %v285_v24  ;;  %v278_v38 = vld [vmem:[#allocation4 + $0x168] sm:$0xff]  ;;  %v277_v40 = vld [vmem:[#allocation4 + $0x160] sm:$0xff]  ;;  %v171_v41 = vld [vmem:[#allocation4 + $0x58] sm:$0xff] }
  0x6f   :  { %204 = vmatprep.subr.mxu0 %v179_v25  ;;  %309 = vmatprep.subr.mxu1 %v284_v26  ;;  %v276_v42 = vld [vmem:[#allocation4 + $0x158] sm:$0xff]  ;;  %v170_v43 = vld [vmem:[#allocation4 + $0x50] sm:$0xff]  ;;  %v169_v45 = vld [vmem:[#allocation4 + $0x48] sm:$0xff] }
  0x70   :  { %205 = vmatpush1.msra.mxu0 %v178_v27  ;;  %310 = vmatpush1.msra.mxu1 %v283_v28  ;;  %v275_v44 = vld [vmem:[#allocation4 + $0x150] sm:$0xff]  ;;  %v274_v46 = vld [vmem:[#allocation4 + $0x148] sm:$0xff]  ;;  %v168_v47 = vld [vmem:[#allocation4 + $0x40] sm:$0xff] }
  0x71   :  { %206 = vmatprep.subr.mxu0 %v177_v29  ;;  %311 = vmatprep.subr.mxu1 %v282_v30  ;;  %v273_v48 = vld [vmem:[#allocation4 + $0x140] sm:$0xff]  ;;  %v167_v49 = vld [vmem:[#allocation4 + $0x38] sm:$0xff]  ;;  %v166_v51 = vld [vmem:[#allocation4 + $0x30] sm:$0xff] }
  0x72   :  { %207 = vmatpush1.msra.mxu0 %v176_v31  ;;  %312 = vmatpush1.msra.mxu1 %v281_v32  ;;  %v272_v50 = vld [vmem:[#allocation4 + $0x138] sm:$0xff]  ;;  %v271_v52 = vld [vmem:[#allocation4 + $0x130] sm:$0xff]  ;;  %v165_v53 = vld [vmem:[#allocation4 + $0x28] sm:$0xff] }
  0x73   :  { %208 = vmatprep.subr.mxu0 %v175_v33  ;;  %313 = vmatprep.subr.mxu1 %v280_v34  ;;  %v270_v54 = vld [vmem:[#allocation4 + $0x128] sm:$0xff]  ;;  %v164_v55 = vld [vmem:[#allocation4 + $0x20] sm:$0xff]  ;;  %v163_v57 = vld [vmem:[#allocation4 + $0x18] sm:$0xff] }
  0x74   :  { %209 = vmatpush1.msra.mxu0 %v174_v35  ;;  %314 = vmatpush1.msra.mxu1 %v279_v36  ;;  %v269_v56 = vld [vmem:[#allocation4 + $0x120] sm:$0xff]  ;;  %v268_v58 = vld [vmem:[#allocation4 + $0x118] sm:$0xff]  ;;  %v162_v59 = vld [vmem:[#allocation4 + $0x10] sm:$0xff] }
  0x75   :  { %210 = vmatprep.subr.mxu0 %v173_v37  ;;  %315 = vmatprep.subr.mxu1 %v278_v38  ;;  %v267_v60 = vld [vmem:[#allocation4 + $0x110] sm:$0xff]  ;;  %v161_v61 = vld [vmem:[#allocation4 + $0x8] sm:$0xff]  ;;  %v160_v63 = vld [vmem:[#allocation4] sm:$0xff] }
  0x76   :  { %211 = vmatpush1.msra.mxu0 %v172_v39  ;;  %316 = vmatpush1.msra.mxu1 %v277_v40  ;;  %v266_v62 = vld [vmem:[#allocation4 + $0x108] sm:$0xff]  ;;  %v265_v1 = vld [vmem:[#allocation4 + $0x100] sm:$0xff]  ;;  %v564_v9 = vld [vmem:[#allocation4 + $0x2f8] sm:$0xff] }
  0x77   :  { %212 = vmatprep.subr.mxu0 %v171_v41  ;;  %317 = vmatprep.subr.mxu1 %v276_v42  ;;  %v4856_v2 = vld [vmem:[%s5098_s0] sm:$0x3]  ;;  %v369_v7 = vld [vmem:[#allocation2 + $0x8] sm:$0xff]  ;;  %v563_v10 = vld [vmem:[#allocation4 + $0x2f0] sm:$0xff] }
  0x78   :  { %213 = vmatpush1.msra.mxu0 %v170_v43  ;;  %318 = vmatpush1.msra.mxu1 %v275_v44  ;;  %v263_v8 = vld [vmem:[#allocation2] sm:$0xff]  ;;  %v562_v11 = vld [vmem:[#allocation4 + $0x2e8] sm:$0xff]  ;;  %v560_v13 = vld [vmem:[#allocation4 + $0x2d8] sm:$0xff] }
  0x79   :  { %214 = vmatprep.subr.mxu0 %v169_v45  ;;  %319 = vmatprep.subr.mxu1 %v274_v46  ;;  %v561_v12 = vld [vmem:[#allocation4 + $0x2e0] sm:$0xff]  ;;  %v559_v14 = vld [vmem:[#allocation4 + $0x2d0] sm:$0xff]  ;;  %v558_v15 = vld [vmem:[#allocation4 + $0x2c8] sm:$0xff] }
  0x7a   :  { %215 = vmatpush1.msra.mxu0 %v168_v47  ;;  %320 = vmatpush1.msra.mxu1 %v273_v48  ;;  %v557_v16 = vld [vmem:[#allocation4 + $0x2c0] sm:$0xff]  ;;  %v556_v17 = vld [vmem:[#allocation4 + $0x2b8] sm:$0xff]  ;;  %v555_v18 = vld [vmem:[#allocation4 + $0x2b0] sm:$0xff] }
  0x7b   :  { %216 = vmatprep.subr.mxu0 %v167_v49  ;;  %321 = vmatprep.subr.mxu1 %v272_v50  ;;  %v554_v19 = vld [vmem:[#allocation4 + $0x2a8] sm:$0xff]  ;;  %v553_v20 = vld [vmem:[#allocation4 + $0x2a0] sm:$0xff]  ;;  %v552_v21 = vld [vmem:[#allocation4 + $0x298] sm:$0xff] }
  0x7c   :  { %217 = vmatpush1.msra.mxu0 %v166_v51  ;;  %322 = vmatpush1.msra.mxu1 %v271_v52  ;;  %v551_v22 = vld [vmem:[#allocation4 + $0x290] sm:$0xff]  ;;  %v550_v23 = vld [vmem:[#allocation4 + $0x288] sm:$0xff]  ;;  %v549_v24 = vld [vmem:[#allocation4 + $0x280] sm:$0xff] }
  0x7d   :  { %218 = vmatprep.subr.mxu0 %v165_v53  ;;  %323 = vmatprep.subr.mxu1 %v270_v54  ;;  %v548_v25 = vld [vmem:[#allocation4 + $0x278] sm:$0xff]  ;;  %v547_v26 = vld [vmem:[#allocation4 + $0x270] sm:$0xff]  ;;  %v546_v27 = vld [vmem:[#allocation4 + $0x268] sm:$0xff] }
  0x7e   :  { %219 = vmatpush1.msra.mxu0 %v164_v55  ;;  %324 = vmatpush1.msra.mxu1 %v269_v56  ;;  %v545_v28 = vld [vmem:[#allocation4 + $0x260] sm:$0xff]  ;;  %v544_v29 = vld [vmem:[#allocation4 + $0x258] sm:$0xff]  ;;  %v543_v30 = vld [vmem:[#allocation4 + $0x250] sm:$0xff] }
  0x7f   :  { %220 = vmatprep.subr.mxu0 %v163_v57  ;;  %325 = vmatprep.subr.mxu1 %v268_v58  ;;  %v542_v31 = vld [vmem:[#allocation4 + $0x248] sm:$0xff]  ;;  %v541_v32 = vld [vmem:[#allocation4 + $0x240] sm:$0xff]  ;;  %v540_v33 = vld [vmem:[#allocation4 + $0x238] sm:$0xff] }
  0x80   :  { %221 = vmatpush1.msra.mxu0 %v162_v59  ;;  %326 = vmatpush1.msra.mxu1 %v267_v60  ;;  %v539_v34 = vld [vmem:[#allocation4 + $0x230] sm:$0xff]  ;;  %v538_v35 = vld [vmem:[#allocation4 + $0x228] sm:$0xff]  ;;  %v537_v36 = vld [vmem:[#allocation4 + $0x220] sm:$0xff] }
  0x81   :  { %222 = vmatprep.subr.mxu0 %v161_v61  ;;  %327 = vmatprep.subr.mxu1 %v266_v62  ;;  %v536_v37 = vld [vmem:[#allocation4 + $0x218] sm:$0xff]  ;;  %v535_v38 = vld [vmem:[#allocation4 + $0x210] sm:$0xff]  ;;  %v534_v39 = vld [vmem:[#allocation4 + $0x208] sm:$0xff] }
  0x82   :  { %223 = vmatpush1.msra.mxu0 %v160_v63  ;;  %328 = vmatpush1.msra.mxu1 %v265_v1  ;;  %v533_v40 = vld [vmem:[#allocation4 + $0x200] sm:$0xff]  ;;  %v637_v47 = vld [vmem:[#allocation2 + $0x10] sm:$0xff]  ;;  %v752_v48 = vld [vmem:[#allocation4 + $0x3f8] sm:$0xff] }
  0x83   :  { %257 = vmatmul.mubr.f32.vlgmr.msra.gmra.mxu0 %v4856_v2  ;;  %362 = vmatmul.mubr.f32.vlgmr.msra.gmra.mxu1 %v4856_v2  ;;  %v751_v49 = vld [vmem:[#allocation4 + $0x3f0] sm:$0xff]  ;;  %v750_v50 = vld [vmem:[#allocation4 + $0x3e8] sm:$0xff]  ;;  %v749_v51 = vld [vmem:[#allocation4 + $0x3e0] sm:$0xff] }
  0x84   :  { %445 = vmatprep.mubr.f32.mxu0 %v4725_v0  ;;  %525 = vmatprep.mubr.f32.mxu1 %v4725_v0  ;;  %v748_v52 = vld [vmem:[#allocation4 + $0x3d8] sm:$0xff]  ;;  %v747_v53 = vld [vmem:[#allocation4 + $0x3d0] sm:$0xff]  ;;  %v746_v54 = vld [vmem:[#allocation4 + $0x3c8] sm:$0xff] }
  0x85   :  { %v745_v55 = vld [vmem:[#allocation4 + $0x3c0] sm:$0xff]  ;;  %v744_v56 = vld [vmem:[#allocation4 + $0x3b8] sm:$0xff]  ;;  %v743_v57 = vld [vmem:[#allocation4 + $0x3b0] sm:$0xff] }
  0x86   :  { %v742_v58 = vld [vmem:[#allocation4 + $0x3a8] sm:$0xff]  ;;  %v741_v59 = vld [vmem:[#allocation4 + $0x3a0] sm:$0xff]  ;;  %v740_v60 = vld [vmem:[#allocation4 + $0x398] sm:$0xff] }
  0x87   :  { %v739_v61 = vld [vmem:[#allocation4 + $0x390] sm:$0xff]  ;;  %v737_v62 = vld [vmem:[#allocation4 + $0x380] sm:$0xff]  ;;  %v736_v63 = vld [vmem:[#allocation4 + $0x378] sm:$0xff] }
  0x88   :  { %v735_v1 = vld [vmem:[#allocation4 + $0x370] sm:$0xff] }
 0x143   :  { %v258_v3 = vpop.f32.mrf.mxu0  ;;  %v363_v4 = vpop.f32.mrf.mxu1 }
 0x145   :  { %v260_v5 = vpop.f32.mrf.mxu0  ;;  %v365_v6 = vpop.f32.mrf.mxu1 }
 0x146   :  { %3626 = vmatprep.subr.msk.mxu0 %vm374_vm0, %v365_v6  ;;  %3629 = vmatprep.subr.msk.mxu1 %vm374_vm0, %v260_v5  ;;  %v732_v5 = vld [vmem:[#allocation4 + $0x358] sm:$0xff]  ;;  %v731_v6 = vld [vmem:[#allocation4 + $0x350] sm:$0xff] }
 0x147   :  { %3627 = vmatpush1.msk.msra.mxu0 %vm374_vm0, %v363_v4  ;;  %3630 = vmatpush1.msk.msra.mxu1 %vm374_vm0, %v258_v3  ;;  %v734_v3 = vld [vmem:[#allocation4 + $0x368] sm:$0xff]  ;;  %v733_v4 = vld [vmem:[#allocation4 + $0x360] sm:$0xff] }
 0x148   :  { %3628 = vmatmul.mubr.msk.f32.vlgmr.msra.gmra.mxu0 %vm370_vm1, %v369_v7  ;;  %3631 = vmatmul.mubr.msk.f32.vlgmr.msra.gmra.mxu1 %vm370_vm1, %v263_v8  ;;  %v730_v7 = vld [vmem:[#allocation4 + $0x348] sm:$0xff]  ;;  %v729_v8 = vld [vmem:[#allocation4 + $0x340] sm:$0xff] }
 0x149   :  { %565 = vmatprep.subr.mxu0 %v564_v9  ;;  %629 = vmatprep.mubr.f32.mxu0 %v4725_v0  ;;  %v728_v9 = vld [vmem:[#allocation4 + $0x338] sm:$0xff] }
 0x14a   :  { %566 = vmatpush1.msra.mxu0 %v563_v10  ;;  %711 = vmatprep.mubr.f32.mxu1 %v4725_v0  ;;  %v727_v10 = vld [vmem:[#allocation4 + $0x330] sm:$0xff] }
 0x14b   :  { %567 = vmatprep.subr.mxu0 %v562_v11  ;;  %v726_v11 = vld [vmem:[#allocation4 + $0x328] sm:$0xff] }
 0x14c   :  { %568 = vmatpush1.msra.mxu0 %v561_v12  ;;  %v725_v12 = vld [vmem:[#allocation4 + $0x320] sm:$0xff] }
 0x14d   :  { %569 = vmatprep.subr.mxu0 %v560_v13  ;;  %v724_v13 = vld [vmem:[#allocation4 + $0x318] sm:$0xff] }
 0x14e   :  { %570 = vmatpush1.msra.mxu0 %v559_v14  ;;  %v723_v14 = vld [vmem:[#allocation4 + $0x310] sm:$0xff] }
 0x14f   :  { %571 = vmatprep.subr.mxu0 %v558_v15  ;;  %v722_v15 = vld [vmem:[#allocation4 + $0x308] sm:$0xff] }
 0x150   :  { %572 = vmatpush1.msra.mxu0 %v557_v16  ;;  %v721_v16 = vld [vmem:[#allocation4 + $0x300] sm:$0xff] }
 0x151   :  { %573 = vmatprep.subr.mxu0 %v556_v17 }
 0x152   :  { %574 = vmatpush1.msra.mxu0 %v555_v18 }
 0x153   :  { %575 = vmatprep.subr.mxu0 %v554_v19 }
 0x154   :  { %576 = vmatpush1.msra.mxu0 %v553_v20 }
 0x155   :  { %577 = vmatprep.subr.mxu0 %v552_v21 }
 0x156   :  { %578 = vmatpush1.msra.mxu0 %v551_v22 }
 0x157   :  { %579 = vmatprep.subr.mxu0 %v550_v23 }
 0x158   :  { %580 = vmatpush1.msra.mxu0 %v549_v24 }
 0x159   :  { %581 = vmatprep.subr.mxu0 %v548_v25  ;;  %v825_v25 = vld [vmem:[#allocation2 + $0x18] sm:$0xff] }
 0x15a   :  { %582 = vmatpush1.msra.mxu0 %v547_v26  ;;  %v1118_v26 = vld [vmem:[#allocation7 + $0x1f8] sm:$0xff] }
 0x15b   :  { %583 = vmatprep.subr.mxu0 %v546_v27  ;;  %v997_v27 = vld [vmem:[#allocation7 + $0x78] sm:$0xff] }
 0x15c   :  { %584 = vmatpush1.msra.mxu0 %v545_v28  ;;  %v1102_v28 = vld [vmem:[#allocation7 + $0x178] sm:$0xff] }
 0x15d   :  { %585 = vmatprep.subr.mxu0 %v544_v29  ;;  %v1012_v29 = vld [vmem:[#allocation7 + $0xf0] sm:$0xff] }
 0x15e   :  { %586 = vmatpush1.msra.mxu0 %v543_v30  ;;  %v1117_v30 = vld [vmem:[#allocation7 + $0x1f0] sm:$0xff] }
 0x15f   :  { %587 = vmatprep.subr.mxu0 %v542_v31  ;;  %v996_v31 = vld [vmem:[#allocation7 + $0x70] sm:$0xff] }
 0x160   :  { %588 = vmatpush1.msra.mxu0 %v541_v32  ;;  %v1101_v32 = vld [vmem:[#allocation7 + $0x170] sm:$0xff] }
 0x161   :  { %589 = vmatprep.subr.mxu0 %v540_v33  ;;  %v1011_v33 = vld [vmem:[#allocation7 + $0xe8] sm:$0xff] }
 0x162   :  { %590 = vmatpush1.msra.mxu0 %v539_v34  ;;  %v1116_v34 = vld [vmem:[#allocation7 + $0x1e8] sm:$0xff] }
 0x163   :  { %591 = vmatprep.subr.mxu0 %v538_v35  ;;  %v995_v35 = vld [vmem:[#allocation7 + $0x68] sm:$0xff] }
 0x164   :  { %592 = vmatpush1.msra.mxu0 %v537_v36  ;;  %v1100_v36 = vld [vmem:[#allocation7 + $0x168] sm:$0xff] }
 0x165   :  { %593 = vmatprep.subr.mxu0 %v536_v37  ;;  %v1010_v37 = vld [vmem:[#allocation7 + $0xe0] sm:$0xff] }
 0x166   :  { %594 = vmatpush1.msra.mxu0 %v535_v38  ;;  %v1115_v38 = vld [vmem:[#allocation7 + $0x1e0] sm:$0xff] }
 0x167   :  { %595 = vmatprep.subr.mxu0 %v534_v39  ;;  %v994_v39 = vld [vmem:[#allocation7 + $0x60] sm:$0xff] }
 0x168   :  { %596 = vmatpush1.msra.mxu0 %v533_v40  ;;  %v1099_v40 = vld [vmem:[#allocation7 + $0x160] sm:$0xff] }
 0x169   :  { %630 = vmatmul.mubr.f32.vlgmr.msra.gmra.mxu0 %v4856_v2 }
 0x16a   :  { %899 = vmatprep.mubr.f32.mxu0 %v4725_v0 }
 0x208   :  { %v447_v41 = vpop.f32.mrf.mxu0  ;;  %v527_v42 = vpop.f32.mrf.mxu1 }
 0x209   :  { %v4872_v43 = vadd.f32 %v527_v42, %v447_v41  ;;  %v1009_v41 = vld [vmem:[#allocation7 + $0xd8] sm:$0xff] }
 0x20a   :  { %v4874_v44 = vpop.f32.mrf.mxu0  ;;  %v529_v17 = vpop.f32.mrf.mxu1  ;;  %v1114_v42 = vld [vmem:[#allocation7 + $0x1d8] sm:$0xff] }
 0x20b   :  { %v530_v19 = vadd.f32 %v529_v17, %v4874_v44  ;;  %v1098_v44 = vld [vmem:[#allocation7 + $0x158] sm:$0xff]  ;;  %v1089_v17 = vld [vmem:[#allocation7 + $0x110] sm:$0xff] }
 0x229   :  { %v631_v45 = vpop.f32.mrf.mxu0 }
 0x22b   :  { %v633_v46 = vpop.f32.mrf.mxu0 }
 0x22c   :  { %3632 = vmatprep.subr.msk.mxu1 %vm374_vm0, %v633_v46  ;;  %v1113_v46 = vld [vmem:[#allocation7 + $0x1d0] sm:$0xff] }
 0x22d   :  { %3633 = vmatpush1.msk.msra.mxu1 %vm374_vm0, %v631_v45  ;;  %v1008_v45 = vld [vmem:[#allocation7 + $0xd0] sm:$0xff] }
 0x22e   :  { %3634 = vmatmul.mubr.msk.f32.vlgmr.msra.gmra.mxu1 %vm370_vm1, %v637_v47  ;;  %753 = vmatprep.subr.mxu1 %v752_v48  ;;  %v992_v47 = vld [vmem:[#allocation7 + $0x50] sm:$0xff] }
 0x22f   :  { %754 = vmatpush1.msra.mxu1 %v751_v49  ;;  %817 = vmatprep.mubr.f32.mxu1 %v4725_v0  ;;  %v738_v0 = vld [vmem:[#allocation4 + $0x388] sm:$0xff]  ;;  %v1097_v48 = vld [vmem:[#allocation7 + $0x150] sm:$0xff] }
 0x230   :  { %755 = vmatprep.subr.mxu1 %v750_v50  ;;  %v1007_v49 = vld [vmem:[#allocation7 + $0xc8] sm:$0xff] }
 0x231   :  { %756 = vmatpush1.msra.mxu1 %v749_v51  ;;  %v1112_v50 = vld [vmem:[#allocation7 + $0x1c8] sm:$0xff] }
 0x232   :  { %757 = vmatprep.subr.mxu1 %v748_v52  ;;  %v991_v51 = vld [vmem:[#allocation7 + $0x48] sm:$0xff] }
 0x233   :  { %758 = vmatpush1.msra.mxu1 %v747_v53  ;;  %v1096_v52 = vld [vmem:[#allocation7 + $0x148] sm:$0xff]  ;;  %v1006_v53 = vld [vmem:[#allocation7 + $0xc0] sm:$0xff] }
 0x234   :  { %759 = vmatprep.subr.mxu1 %v746_v54  ;;  %v1111_v54 = vld [vmem:[#allocation7 + $0x1c0] sm:$0xff] }
 0x235   :  { %760 = vmatpush1.msra.mxu1 %v745_v55  ;;  %v990_v55 = vld [vmem:[#allocation7 + $0x40] sm:$0xff] }
 0x236   :  { %761 = vmatprep.subr.mxu1 %v744_v56  ;;  %v1095_v56 = vld [vmem:[#allocation7 + $0x140] sm:$0xff] }
 0x237   :  { %762 = vmatpush1.msra.mxu1 %v743_v57  ;;  %v1005_v57 = vld [vmem:[#allocation7 + $0xb8] sm:$0xff] }
 0x238   :  { %763 = vmatprep.subr.mxu1 %v742_v58  ;;  %v1110_v58 = vld [vmem:[#allocation7 + $0x1b8] sm:$0xff] }
 0x239   :  { %764 = vmatpush1.msra.mxu1 %v741_v59  ;;  %v989_v59 = vld [vmem:[#allocation7 + $0x38] sm:$0xff] }
 0x23a   :  { %765 = vmatprep.subr.mxu1 %v740_v60  ;;  %v1094_v60 = vld [vmem:[#allocation7 + $0x138] sm:$0xff] }
 0x23b   :  { %766 = vmatpush1.msra.mxu1 %v739_v61  ;;  %v1004_v61 = vld [vmem:[#allocation7 + $0xb0] sm:$0xff] }
 0x23c   :  { %767 = vmatprep.subr.mxu1 %v738_v0  ;;  %v1109_v0 = vld [vmem:[#allocation7 + $0x1b0] sm:$0xff] }
 0x23d   :  { %768 = vmatpush1.msra.mxu1 %v737_v62  ;;  %v988_v62 = vld [vmem:[#allocation7 + $0x30] sm:$0xff] }
 0x23e   :  { %769 = vmatprep.subr.mxu1 %v736_v63  ;;  %v1093_v63 = vld [vmem:[#allocation7 + $0x130] sm:$0xff] }
 0x23f   :  { %770 = vmatpush1.msra.mxu1 %v735_v1  ;;  %v1003_v1 = vld [vmem:[#allocation7 + $0xa8] sm:$0xff] }
 0x240   :  { %771 = vmatprep.subr.mxu1 %v734_v3  ;;  %v1108_v3 = vld [vmem:[#allocation7 + $0x1a8] sm:$0xff] }
 0x241   :  { %772 = vmatpush1.msra.mxu1 %v733_v4  ;;  %v987_v4 = vld [vmem:[#allocation7 + $0x28] sm:$0xff] }
 0x242   :  { %773 = vmatprep.subr.mxu1 %v732_v5  ;;  %v1092_v5 = vld [vmem:[#allocation7 + $0x128] sm:$0xff] }
 0x243   :  { %774 = vmatpush1.msra.mxu1 %v731_v6  ;;  %v1002_v6 = vld [vmem:[#allocation7 + $0xa0] sm:$0xff] }
 0x244   :  { %775 = vmatprep.subr.mxu1 %v730_v7  ;;  %v1107_v7 = vld [vmem:[#allocation7 + $0x1a0] sm:$0xff] }
 0x245   :  { %776 = vmatpush1.msra.mxu1 %v729_v8  ;;  %v986_v8 = vld [vmem:[#allocation7 + $0x20] sm:$0xff] }
 0x246   :  { %777 = vmatprep.subr.mxu1 %v728_v9  ;;  %v1091_v9 = vld [vmem:[#allocation7 + $0x120] sm:$0xff] }
 0x247   :  { %778 = vmatpush1.msra.mxu1 %v727_v10  ;;  %v1001_v10 = vld [vmem:[#allocation7 + $0x98] sm:$0xff] }
 0x248   :  { %779 = vmatprep.subr.mxu1 %v726_v11  ;;  %v1106_v11 = vld [vmem:[#allocation7 + $0x198] sm:$0xff] }
 0x249   :  { %780 = vmatpush1.msra.mxu1 %v725_v12  ;;  %v985_v12 = vld [vmem:[#allocation7 + $0x18] sm:$0xff] }
 0x24a   :  { %781 = vmatprep.subr.mxu1 %v724_v13  ;;  %v1090_v13 = vld [vmem:[#allocation7 + $0x118] sm:$0xff] }
 0x24b   :  { %782 = vmatpush1.msra.mxu1 %v723_v14  ;;  %v1000_v14 = vld [vmem:[#allocation7 + $0x90] sm:$0xff] }
 0x24c   :  { %783 = vmatprep.subr.mxu1 %v722_v15  ;;  %v1105_v15 = vld [vmem:[#allocation7 + $0x190] sm:$0xff] }
 0x24d   :  { %784 = vmatpush1.msra.mxu1 %v721_v16  ;;  %v984_v16 = vld [vmem:[#allocation7 + $0x10] sm:$0xff] }
 0x24e   :  { %818 = vmatmul.mubr.f32.vlgmr.msra.gmra.mxu1 %v4856_v2  ;;  %v1013_v2 = vld [vmem:[#allocation7 + $0xf8] sm:$0xff]  ;;  %3733 = vmatprep.subr.mxu1 %v1118_v26  ;;  %v1087_v26 = vld [vmem:[#allocation7 + $0x100] sm:$0xff] }
 0x24f   :  { %3734 = vmatpush3.msra.mxu1 %v1102_v28 }
 0x250   :  { %3735 = vmatprep.subr.mxu1 %v1117_v30 }
 0x251   :  { %3736 = vmatpush3.msra.mxu1 %v1101_v32 }
 0x252   :  { %3737 = vmatprep.subr.mxu1 %v1116_v34 }
 0x253   :  { %3738 = vmatpush3.msra.mxu1 %v1100_v36 }
 0x254   :  { %3739 = vmatprep.subr.mxu1 %v1115_v38 }
 0x255   :  { %3740 = vmatpush3.msra.mxu1 %v1099_v40 }
 0x256   :  { %3741 = vmatprep.subr.mxu1 %v1114_v42 }
 0x257   :  { %3742 = vmatpush3.msra.mxu1 %v1098_v44 }
 0x258   :  { %3743 = vmatprep.subr.mxu1 %v1113_v46 }
 0x259   :  { %3744 = vmatpush3.msra.mxu1 %v1097_v48 }
 0x25a   :  { %3745 = vmatprep.subr.mxu1 %v1112_v50 }
 0x25b   :  { %3746 = vmatpush3.msra.mxu1 %v1096_v52 }
 0x25c   :  { %3747 = vmatprep.subr.mxu1 %v1111_v54 }
 0x25d   :  { %3748 = vmatpush3.msra.mxu1 %v1095_v56 }
 0x25e   :  { %3749 = vmatprep.subr.mxu1 %v1110_v58 }
 0x25f   :  { %3750 = vmatpush3.msra.mxu1 %v1094_v60 }
 0x260   :  { %3751 = vmatprep.subr.mxu1 %v1109_v0 }
 0x261   :  { %3752 = vmatpush3.msra.mxu1 %v1093_v63 }
 0x262   :  { %3753 = vmatprep.subr.mxu1 %v1108_v3  ;;  %v954_v3 = vlaneseq }
 0x263   :  { %3754 = vmatpush3.msra.mxu1 %v1092_v5 }
 0x264   :  { %3755 = vmatprep.subr.mxu1 %v1107_v7  ;;  %v955_v5 = vshrl.u32 %v954_v3, 7  ;;  %v952_v7 = vld [vmem:[%s5101_s3] sm:$0x3] }
 0x265   :  { %3756 = vmatpush3.msra.mxu1 %v1091_v9  ;;  %v1356_v3 = vld [vmem:[#allocation7 + $0x200] sm:$0xff] }
 0x266   :  { %3757 = vmatprep.subr.mxu1 %v1106_v11 }
 0x267   :  { %3758 = vmatpush3.msra.mxu1 %v1090_v13 }
 0x268   :  { %3759 = vmatprep.subr.mxu1 %v1105_v15 }
 0x269   :  { %3760 = vmatpush3.msra.mxu1 %v1089_v17 }
 0x2ee   :  { %v713_v18 = vpop.f32.mrf.mxu1 }
 0x2ef   :  { %v4883_v20 = vadd.f32 %v713_v18, %v4872_v43  ;;  %v993_v43 = vld [vmem:[#allocation7 + $0x58] sm:$0xff]  ;;  %v999_v18 = vld [vmem:[#allocation7 + $0x88] sm:$0xff] }
 0x2f0   :  { %v715_v21 = vpop.f32.mrf.mxu1 }
 0x2f1   :  { %v4885_v22 = vadd.f32 %v715_v21, %v530_v19  ;;  %v1104_v19 = vld [vmem:[#allocation7 + $0x188] sm:$0xff] }
 0x2f2   :  { %v983_v21 = vld [vmem:[#allocation7 + $0x8] sm:$0xff]  ;;  %3761 = vmatprep.subr.mxu1 %v1104_v19 }
 0x30e   :  { %v819_v23 = vpop.f32.mrf.mxu1 }
 0x310   :  { %v821_v24 = vpop.f32.mrf.mxu1 }
 0x311   :  { %3635 = vmatprep.subr.msk.mxu0 %vm374_vm0, %v821_v24  ;;  %v998_v24 = vld [vmem:[#allocation7 + $0x80] sm:$0xff] }
 0x312   :  { %3636 = vmatpush1.msk.msra.mxu0 %vm374_vm0, %v819_v23  ;;  %v1088_v23 = vld [vmem:[#allocation7 + $0x108] sm:$0xff] }
 0x313   :  { %3637 = vmatmul.mubr.msk.f32.vlgmr.msra.gmra.mxu0 %vm370_vm1, %v825_v25  ;;  %3698 = vmatprep.subr.mxu0 %v1013_v2  ;;  %v1103_v25 = vld [vmem:[#allocation7 + $0x180] sm:$0xff] }
 0x314   :  { %3699 = vmatpush3.msra.mxu0 %v997_v27  ;;  %v982_v2 = vld [vmem:[#allocation7] sm:$0xff]  ;;  %3762 = vmatpush3.msra.mxu1 %v1088_v23 }
 0x315   :  { %3700 = vmatprep.subr.mxu0 %v1012_v29  ;;  %3763 = vmatprep.subr.mxu1 %v1103_v25 }
 0x316   :  { %3701 = vmatpush3.msra.mxu0 %v996_v31  ;;  %3764 = vmatpush3.msra.mxu1 %v1087_v26 }
 0x317   :  { %3702 = vmatprep.subr.mxu0 %v1011_v33 }
 0x318   :  { %3703 = vmatpush3.msra.mxu0 %v995_v35 }
 0x319   :  { %3704 = vmatprep.subr.mxu0 %v1010_v37 }
 0x31a   :  { %3705 = vmatpush3.msra.mxu0 %v994_v39 }
 0x31b   :  { %3706 = vmatprep.subr.mxu0 %v1009_v41 }
 0x31c   :  { %3707 = vmatpush3.msra.mxu0 %v993_v43 }
 0x31d   :  { %3708 = vmatprep.subr.mxu0 %v1008_v45 }
 0x31e   :  { %3709 = vmatpush3.msra.mxu0 %v992_v47 }
 0x31f   :  { %3710 = vmatprep.subr.mxu0 %v1007_v49 }
 0x320   :  { %3711 = vmatpush3.msra.mxu0 %v991_v51 }
 0x321   :  { %3712 = vmatprep.subr.mxu0 %v1006_v53 }
 0x322   :  { %3713 = vmatpush3.msra.mxu0 %v990_v55 }
 0x323   :  { %3714 = vmatprep.subr.mxu0 %v1005_v57 }
 0x324   :  { %3715 = vmatpush3.msra.mxu0 %v989_v59 }
 0x325   :  { %3716 = vmatprep.subr.mxu0 %v1004_v61 }
 0x326   :  { %3717 = vmatpush3.msra.mxu0 %v988_v62 }
 0x327   :  { %3718 = vmatprep.subr.mxu0 %v1003_v1 }
 0x328   :  { %3719 = vmatpush3.msra.mxu0 %v987_v4 }
 0x329   :  { %3720 = vmatprep.subr.mxu0 %v1002_v6  ;;  %v956_v6 = vsub.s32 0, %v955_v5 }
 0x32a   :  { %3721 = vmatpush3.msra.mxu0 %v986_v8  ;;  %v960_v8 = vsub.s32 1, %v955_v5 }
 0x32b   :  { %3722 = vmatprep.subr.mxu0 %v1001_v10  ;;  %v957_v10 = vrot.slane %v952_v7, %v956_v6 }
 0x32c   :  { %3723 = vmatpush3.msra.mxu0 %v985_v12  ;;  %v966_v12 = vld [vmem:[%s5102_s4] sm:$0x3]  ;;  %v961_v15 = vrot.slane %v952_v7, %v960_v8 }
 0x32d   :  { %3724 = vmatprep.subr.mxu0 %v1000_v14 }
 0x32e   :  { %3725 = vmatpush3.msra.mxu0 %v984_v16 }
 0x32f   :  { %3726 = vmatprep.subr.mxu0 %v999_v18  ;;  %v971_v18 = vrot.slane %v966_v12, %v956_v6 }
 0x330   :  { %3727 = vmatpush3.msra.mxu0 %v983_v21  ;;  %v975_v21 = vrot.slane %v966_v12, %v960_v8  ;;  %v1460_v12 = vld [vmem:[#allocation6 + $0x28] sm:$0xff] }
 0x331   :  { %3728 = vmatprep.subr.mxu0 %v998_v24 }
 0x332   :  { %3729 = vmatpush3.msra.mxu0 %v982_v2 }
 0x3d3   :  { %v901_v27 = vpop.f32.mrf.mxu0 }
 0x3d4   :  { %v906_v28 = vadd.f32 %v901_v27, %v4883_v20  ;;  %v1190_v27 = vld [vmem:[#allocation6 + $0x10] sm:$0xff] }
 0x3d5   :  { %v903_v29 = vpop.f32.mrf.mxu0 }
 0x3d6   :  { %v908_v30 = vrot.slane %v906_v28, 4  ;;  %v922_v31 = vmul.f32 %v906_v28, %v906_v28  ;;  %v907_v32 = vadd.f32 %v903_v29, %v4885_v22 }
 0x3d8   :  { %v909_v33 = vadd.f32 %v908_v30, %v906_v28  ;;  %v924_v34 = vrot.slane %v922_v31, 4  ;;  %v914_v35 = vrot.slane %v907_v32, 4  ;;  %v923_v36 = vmul.f32 %v907_v32, %v907_v32 }
 0x3da   :  { %v910_v37 = vrot.slane %v909_v33, 2  ;;  %v925_v38 = vadd.f32 %v924_v34, %v922_v31  ;;  %v915_v39 = vadd.f32 %v914_v35, %v907_v32  ;;  %v930_v40 = vrot.slane %v923_v36, 4  ;;  %v1191_v35 = vld [vmem:[#allocation6 + $0x18] sm:$0xff] }
 0x3dc   :  { %v911_v41 = vadd.f32 %v910_v37, %v909_v33  ;;  %v926_v42 = vrot.slane %v925_v38, 2  ;;  %v916_v43 = vrot.slane %v915_v39, 2  ;;  %v931_v44 = vadd.f32 %v930_v40, %v923_v36  ;;  %v1085_v36 = vld [vmem:[#allocation6 + $0x8] sm:$0xff]  ;;  %v1387_v37 = vld [vmem:[#allocation7 + $0x2f8] sm:$0xff]  ;;  %v1370_v40 = vld [vmem:[#allocation7 + $0x270] sm:$0xff] }
 0x3de   :  { %v912_v45 = vrot.slane %v911_v41, 1  ;;  %v927_v46 = vadd.f32 %v926_v42, %v925_v38  ;;  %v917_v20 = vadd.f32 %v916_v43, %v915_v39  ;;  %v932_v47 = vrot.slane %v931_v44, 2  ;;  %v1371_v38 = vld [vmem:[#allocation7 + $0x278] sm:$0xff]  ;;  %v1386_v39 = vld [vmem:[#allocation7 + $0x2f0] sm:$0xff]  ;;  %v1369_v42 = vld [vmem:[#allocation7 + $0x268] sm:$0xff] }
 0x3df   :  { %v1384_v43 = vld [vmem:[#allocation7 + $0x2e0] sm:$0xff] }
 0x3e0   :  { %v913_v48 = vadd.f32 %v912_v45, %v911_v41  ;;  %v928_v49 = vrot.slane %v927_v46, 1  ;;  %v918_v50 = vrot.slane %v917_v20, 1  ;;  %v933_v22 = vadd.f32 %v932_v47, %v931_v44  ;;  %v1385_v41 = vld [vmem:[#allocation7 + $0x2e8] sm:$0xff]  ;;  %v1368_v44 = vld [vmem:[#allocation7 + $0x260] sm:$0xff]  ;;  %v1383_v45 = vld [vmem:[#allocation7 + $0x2d8] sm:$0xff] }
 0x3e1   :  { %v1366_v47 = vld [vmem:[#allocation7 + $0x250] sm:$0xff] }
 0x3e2   :  { %v920_v51 = vmul.f32 0.125, %v913_v48  ;;  %v929_v52 = vadd.f32 %v928_v49, %v927_v46  ;;  %v919_v53 = vadd.f32 %v918_v50, %v917_v20  ;;  %v934_v54 = vrot.slane %v933_v22, 1  ;;  %v1367_v46 = vld [vmem:[#allocation7 + $0x258] sm:$0xff]  ;;  %v1382_v20 = vld [vmem:[#allocation7 + $0x2d0] sm:$0xff]  ;;  %v1381_v48 = vld [vmem:[#allocation7 + $0x2c8] sm:$0xff] }
 0x3e3   :  { %v1365_v49 = vld [vmem:[#allocation7 + $0x248] sm:$0xff]  ;;  %v1380_v50 = vld [vmem:[#allocation7 + $0x2c0] sm:$0xff] }
 0x3e4   :  { %v936_v55 = vmul.f32 0.125, %v929_v52  ;;  %v938_v56 = vmul.f32 %v920_v51, %v920_v51  ;;  %v921_v57 = vmul.f32 0.125, %v919_v53  ;;  %v935_v58 = vadd.f32 %v934_v54, %v933_v22  ;;  %v1364_v22 = vld [vmem:[#allocation7 + $0x240] sm:$0xff]  ;;  %v1363_v52 = vld [vmem:[#allocation7 + $0x238] sm:$0xff]  ;;  %v1378_v53 = vld [vmem:[#allocation7 + $0x2b0] sm:$0xff] }
 0x3e5   :  { %v948_v9 = vsub.f32 %v906_v28, %v920_v51  ;;  %v1084_v28 = vld [vmem:[#allocation6] sm:$0xff]  ;;  %v1379_v51 = vld [vmem:[#allocation7 + $0x2b8] sm:$0xff]  ;;  %v1362_v54 = vld [vmem:[#allocation7 + $0x230] sm:$0xff] }
 0x3e6   :  { %v940_v59 = vsub.f32 %v936_v55, %v938_v56  ;;  %v939_v60 = vmul.f32 %v921_v57, %v921_v57  ;;  %v937_v61 = vmul.f32 0.125, %v935_v58  ;;  %v949_v14 = vsub.f32 %v907_v32, %v921_v57  ;;  %v1377_v55 = vld [vmem:[#allocation7 + $0x2a8] sm:$0xff]  ;;  %v1376_v57 = vld [vmem:[#allocation7 + $0x2a0] sm:$0xff] }
 0x3e7   :  { %v1361_v56 = vld [vmem:[#allocation7 + $0x228] sm:$0xff]  ;;  %v1360_v58 = vld [vmem:[#allocation7 + $0x220] sm:$0xff] }
 0x3e8   :  { %v942_v0 = vmax.f32 %v940_v59, 0.0  ;;  %v941_v62 = vsub.f32 %v937_v61, %v939_v60  ;;  %v1375_v59 = vld [vmem:[#allocation7 + $0x298] sm:$0xff]  ;;  %v1374_v61 = vld [vmem:[#allocation7 + $0x290] sm:$0xff] }
 0x3e9   :  { %v1359_v60 = vld [vmem:[#allocation7 + $0x218] sm:$0xff] }
 0x3ea   :  { %v944_v63 = vadd.f32 1e-05, %v942_v0  ;;  %v943_v1 = vmax.f32 %v941_v62, 0.0  ;;  %v1358_v0 = vld [vmem:[#allocation7 + $0x210] sm:$0xff]  ;;  %v1373_v62 = vld [vmem:[#allocation7 + $0x288] sm:$0xff] }
 0x3ec   :  { %4519 = vrsqrt.f32 %v944_v63  ;;  %v945_v4 = vadd.f32 1e-05, %v943_v1  ;;  %v1357_v63 = vld [vmem:[#allocation7 + $0x208] sm:$0xff]  ;;  %v1372_v1 = vld [vmem:[#allocation7 + $0x280] sm:$0xff] }
 0x3ee   :  { %4521 = vrsqrt.f32 %v945_v4  ;;  %v1459_v4 = vld [vmem:[#allocation6 + $0x20] sm:$0xff] }
 0x3f9   :  { %v4520_v11 = vpop.eup %4519 }
 0x3fa   :  { %v950_v13 = vmul.f32 %v4520_v11, %v948_v9 }
 0x3fb   :  { %v4522_v16 = vpop.eup %4521 }
 0x3fc   :  { %v964_v17 = vmul.f32 %v957_v10, %v950_v13  ;;  %v951_v19 = vmul.f32 %v4522_v16, %v949_v14  ;;  %v1576_v13 = vld [vmem:[#allocation7 + $0x3f8] sm:$0xff]  ;;  %v1559_v16 = vld [vmem:[#allocation7 + $0x370] sm:$0xff] }
 0x3fd   :  { %v1560_v14 = vld [vmem:[#allocation7 + $0x378] sm:$0xff] }
 0x3fe   :  { %v965_v23 = vmul.f32 %v961_v15, %v951_v19  ;;  %v978_v24 = vadd.f32 %v971_v18, %v964_v17  ;;  %v1575_v15 = vld [vmem:[#allocation7 + $0x3f0] sm:$0xff]  ;;  %v1574_v17 = vld [vmem:[#allocation7 + $0x3e8] sm:$0xff]  ;;  %v1573_v19 = vld [vmem:[#allocation7 + $0x3e0] sm:$0xff] }
 0x3ff   :  { %v1558_v18 = vld [vmem:[#allocation7 + $0x368] sm:$0xff] }
 0x400   :  { %v979_v25 = vadd.f32 %v975_v21, %v965_v23  ;;  %v4900_v26 = vmax.f32 %v978_v24, 0.0  ;;  %v1557_v21 = vld [vmem:[#allocation7 + $0x360] sm:$0xff]  ;;  %v1572_v23 = vld [vmem:[#allocation7 + $0x3d8] sm:$0xff] }
 0x401   :  { %v1556_v24 = vld [vmem:[#allocation7 + $0x358] sm:$0xff] }
 0x402   :  { %v4898_v2 = vmax.f32 %v979_v25, 0.0  ;;  %v1571_v25 = vld [vmem:[#allocation7 + $0x3d0] sm:$0xff] }
 0x404   :  { %1078 = vmatprep.mubr.f32.mxu0 %v4898_v2  ;;  %1183 = vmatprep.mubr.f32.mxu1 %v4898_v2 }
 0x405   :  { %1079 = vmatmul.mubr.f32.vlgmr.msra.gmra.mxu0 %v4900_v26  ;;  %1184 = vmatmul.mubr.f32.vlgmr.msra.gmra.mxu1 %v4900_v26 }
 0x406   :  { %4076 = vmatprep.mubr.msk.f32.mxu0 %vm1192_vm2, %v1190_v27  ;;  %4081 = vmatprep.mubr.msk.f32.mxu1 %vm1192_vm2, %v1084_v28  ;;  %v1555_v27 = vld [vmem:[#allocation7 + $0x350] sm:$0xff]  ;;  %v1570_v28 = vld [vmem:[#allocation7 + $0x3c8] sm:$0xff] }
 0x4c5   :  { %v3730_v29 = vpop.f32.mrf.mxu0  ;;  %v3765_v30 = vpop.f32.mrf.mxu1 }
 0x4c7   :  { %v3731_v31 = vpop.f32.mrf.mxu0  ;;  %v3766_v32 = vpop.f32.mrf.mxu1 }
 0x4c8   :  { %v3732_v33 = vadd.f32 %v3731_v31, %v3730_v29  ;;  %v3767_v34 = vadd.f32 %v3766_v32, %v3765_v30  ;;  %v1554_v29 = vld [vmem:[#allocation7 + $0x348] sm:$0xff]  ;;  %v1553_v30 = vld [vmem:[#allocation7 + $0x340] sm:$0xff]  ;;  %v1568_v31 = vld [vmem:[#allocation7 + $0x3b8] sm:$0xff] }
 0x4c9   :  { %v1552_v32 = vld [vmem:[#allocation7 + $0x338] sm:$0xff] }
 0x4ca   :  { %4074 = vmatprep.subr.mxu0 %v3767_v34  ;;  %4079 = vmatprep.subr.mxu1 %v3732_v33 }
 0x4cb   :  { %4075 = vmatpush3.msra.mxu0 %v3767_v34  ;;  %4080 = vmatpush3.msra.mxu1 %v3732_v33  ;;  %v1567_v33 = vld [vmem:[#allocation7 + $0x3b0] sm:$0xff] }
 0x4cc   :  { %4077 = vmatmul.mubr.msk.f32.vlgmr.msra.gmra.mxu0 %vm1192_vm2, %v1191_v35  ;;  %4082 = vmatmul.mubr.msk.f32.vlgmr.msra.gmra.mxu1 %vm1192_vm2, %v1085_v36  ;;  %v1551_v34 = vld [vmem:[#allocation7 + $0x330] sm:$0xff]  ;;  %v1566_v35 = vld [vmem:[#allocation7 + $0x3a8] sm:$0xff] }
 0x4cd   :  { %3774 = vmatprep.subr.mxu0 %v1387_v37  ;;  %1452 = vmatprep.mubr.f32.mxu0 %v4898_v2  ;;  %v1550_v36 = vld [vmem:[#allocation7 + $0x328] sm:$0xff]  ;;  %v1565_v37 = vld [vmem:[#allocation7 + $0x3a0] sm:$0xff] }
 0x4ce   :  { %3775 = vmatpush3.msra.mxu0 %v1371_v38  ;;  %4086 = vmatprep.mubr.msk.f32.mxu1 %vm1192_vm2, %v1459_v4  ;;  %v1549_v38 = vld [vmem:[#allocation7 + $0x320] sm:$0xff]  ;;  %v1789_v4 = vld [vmem:[#allocation10 + $0x48] sm:$0xff] }
 0x4cf   :  { %3776 = vmatprep.subr.mxu0 %v1386_v39  ;;  %v1564_v39 = vld [vmem:[#allocation7 + $0x398] sm:$0xff] }
 0x4d0   :  { %3777 = vmatpush3.msra.mxu0 %v1370_v40  ;;  %v1548_v40 = vld [vmem:[#allocation7 + $0x318] sm:$0xff] }
 0x4d1   :  { %3778 = vmatprep.subr.mxu0 %v1385_v41  ;;  %v1563_v41 = vld [vmem:[#allocation7 + $0x390] sm:$0xff] }
 0x4d2   :  { %3779 = vmatpush3.msra.mxu0 %v1369_v42  ;;  %v1547_v42 = vld [vmem:[#allocation7 + $0x310] sm:$0xff] }
 0x4d3   :  { %3780 = vmatprep.subr.mxu0 %v1384_v43  ;;  %v1562_v43 = vld [vmem:[#allocation7 + $0x388] sm:$0xff] }
 0x4d4   :  { %3781 = vmatpush3.msra.mxu0 %v1368_v44  ;;  %v1546_v44 = vld [vmem:[#allocation7 + $0x308] sm:$0xff] }
 0x4d5   :  { %3782 = vmatprep.subr.mxu0 %v1383_v45  ;;  %v1561_v45 = vld [vmem:[#allocation7 + $0x380] sm:$0xff] }
 0x4d6   :  { %3783 = vmatpush3.msra.mxu0 %v1367_v46  ;;  %v1545_v46 = vld [vmem:[#allocation7 + $0x300] sm:$0xff] }
 0x4d7   :  { %3784 = vmatprep.subr.mxu0 %v1382_v20  ;;  %v1648_v20 = vld [vmem:[#allocation6 + $0x30] sm:$0xff] }
 0x4d8   :  { %3785 = vmatpush3.msra.mxu0 %v1366_v47 }
 0x4d9   :  { %3786 = vmatprep.subr.mxu0 %v1381_v48 }
 0x4da   :  { %3787 = vmatpush3.msra.mxu0 %v1365_v49 }
 0x4db   :  { %3788 = vmatprep.subr.mxu0 %v1380_v50 }
 0x4dc   :  { %3789 = vmatpush3.msra.mxu0 %v1364_v22 }
 0x4dd   :  { %3790 = vmatprep.subr.mxu0 %v1379_v51 }
 0x4de   :  { %3791 = vmatpush3.msra.mxu0 %v1363_v52 }
 0x4df   :  { %3792 = vmatprep.subr.mxu0 %v1378_v53 }
 0x4e0   :  { %3793 = vmatpush3.msra.mxu0 %v1362_v54 }
 0x4e1   :  { %3794 = vmatprep.subr.mxu0 %v1377_v55  ;;  %v1649_v55 = vld [vmem:[#allocation6 + $0x38] sm:$0xff] }
 0x4e2   :  { %3795 = vmatpush3.msra.mxu0 %v1361_v56  ;;  %v1891_v56 = vld [vmem:[#allocation10 + $0xf8] sm:$0xff] }
 0x4e3   :  { %3796 = vmatprep.subr.mxu0 %v1376_v57  ;;  %v1794_v57 = vld [vmem:[#allocation10 + $0x70] sm:$0xff] }
 0x4e4   :  { %3797 = vmatpush3.msra.mxu0 %v1360_v58  ;;  %v1890_v58 = vld [vmem:[#allocation10 + $0xf0] sm:$0xff] }
 0x4e5   :  { %3798 = vmatprep.subr.mxu0 %v1375_v59  ;;  %v1793_v59 = vld [vmem:[#allocation10 + $0x68] sm:$0xff] }
 0x4e6   :  { %3799 = vmatpush3.msra.mxu0 %v1359_v60  ;;  %v1889_v60 = vld [vmem:[#allocation10 + $0xe8] sm:$0xff] }
 0x4e7   :  { %3800 = vmatprep.subr.mxu0 %v1374_v61  ;;  %v1792_v61 = vld [vmem:[#allocation10 + $0x60] sm:$0xff] }
 0x4e8   :  { %3801 = vmatpush3.msra.mxu0 %v1358_v0  ;;  %v1888_v0 = vld [vmem:[#allocation10 + $0xe0] sm:$0xff] }
 0x4e9   :  { %3802 = vmatprep.subr.mxu0 %v1373_v62  ;;  %v1791_v62 = vld [vmem:[#allocation10 + $0x58] sm:$0xff] }
 0x4ea   :  { %3803 = vmatpush3.msra.mxu0 %v1357_v63  ;;  %v1887_v63 = vld [vmem:[#allocation10 + $0xd8] sm:$0xff] }
 0x4eb   :  { %3804 = vmatprep.subr.mxu0 %v1372_v1  ;;  %v1790_v1 = vld [vmem:[#allocation10 + $0x50] sm:$0xff] }
 0x4ec   :  { %3805 = vmatpush3.msra.mxu0 %v1356_v3  ;;  %v1886_v3 = vld [vmem:[#allocation10 + $0xd0] sm:$0xff] }
 0x4ed   :  { %1453 = vmatmul.mubr.f32.vlgmr.msra.gmra.mxu0 %v4900_v26 }
 0x4ee   :  { %4091 = vmatprep.mubr.msk.f32.mxu0 %vm1192_vm2, %v1648_v20 }
 0x58c   :  { %v4078_v5 = vpop.f32.mrf.mxu0  ;;  %v4083_v6 = vpop.f32.mrf.mxu1 }
 0x58d   :  { %v4913_v7 = vadd.f32 %v4083_v6, %v4078_v5  ;;  %v1885_v5 = vld [vmem:[#allocation10 + $0xc8] sm:$0xff]  ;;  %v1788_v6 = vld [vmem:[#allocation10 + $0x40] sm:$0xff] }
 0x58e   :  { %v4915_v8 = vpop.f32.mrf.mxu0  ;;  %v1346_v47 = vpop.f32.mrf.mxu1 }
 0x58f   :  { %v1347_v49 = vadd.f32 %v1346_v47, %v4915_v8  ;;  %v1787_v8 = vld [vmem:[#allocation10 + $0x38] sm:$0xff] }
 0x5ad   :  { %v3806_v9 = vpop.f32.mrf.mxu0 }
 0x5af   :  { %v3807_v10 = vpop.f32.mrf.mxu0 }
 0x5b0   :  { %v3808_v11 = vadd.f32 %v3807_v10, %v3806_v9  ;;  %v1883_v9 = vld [vmem:[#allocation10 + $0xb8] sm:$0xff]  ;;  %v1786_v10 = vld [vmem:[#allocation10 + $0x30] sm:$0xff] }
 0x5b2   :  { %4084 = vmatprep.subr.mxu1 %v3808_v11 }
 0x5b3   :  { %4085 = vmatpush3.msra.mxu1 %v3808_v11  ;;  %v1882_v11 = vld [vmem:[#allocation10 + $0xb0] sm:$0xff] }
 0x5b4   :  { %4087 = vmatmul.mubr.msk.f32.vlgmr.msra.gmra.mxu1 %vm1192_vm2, %v1460_v12  ;;  %3812 = vmatprep.subr.mxu1 %v1576_v13  ;;  %v1785_v12 = vld [vmem:[#allocation10 + $0x28] sm:$0xff] }
 0x5b5   :  { %3813 = vmatpush3.msra.mxu1 %v1560_v14  ;;  %1641 = vmatprep.mubr.f32.mxu1 %v4898_v2  ;;  %v1569_v2 = vld [vmem:[#allocation7 + $0x3c0] sm:$0xff]  ;;  %v1881_v13 = vld [vmem:[#allocation10 + $0xa8] sm:$0xff] }
 0x5b6   :  { %3814 = vmatprep.subr.mxu1 %v1575_v15  ;;  %v1784_v14 = vld [vmem:[#allocation10 + $0x20] sm:$0xff] }
 0x5b7   :  { %3815 = vmatpush3.msra.mxu1 %v1559_v16  ;;  %v1880_v15 = vld [vmem:[#allocation10 + $0xa0] sm:$0xff]  ;;  %v1783_v16 = vld [vmem:[#allocation10 + $0x18] sm:$0xff] }
 0x5b8   :  { %3816 = vmatprep.subr.mxu1 %v1574_v17  ;;  %v1879_v17 = vld [vmem:[#allocation10 + $0x98] sm:$0xff] }
 0x5b9   :  { %3817 = vmatpush3.msra.mxu1 %v1558_v18  ;;  %v1782_v18 = vld [vmem:[#allocation10 + $0x10] sm:$0xff] }
 0x5ba   :  { %3818 = vmatprep.subr.mxu1 %v1573_v19  ;;  %v1878_v19 = vld [vmem:[#allocation10 + $0x90] sm:$0xff] }
 0x5bb   :  { %3819 = vmatpush3.msra.mxu1 %v1557_v21  ;;  %v1781_v21 = vld [vmem:[#allocation10 + $0x8] sm:$0xff] }
 0x5bc   :  { %3820 = vmatprep.subr.mxu1 %v1572_v23  ;;  %v1877_v23 = vld [vmem:[#allocation10 + $0x88] sm:$0xff] }
 0x5bd   :  { %3821 = vmatpush3.msra.mxu1 %v1556_v24  ;;  %v1780_v24 = vld [vmem:[#allocation10] sm:$0xff] }
 0x5be   :  { %3822 = vmatprep.subr.mxu1 %v1571_v25  ;;  %v1876_v25 = vld [vmem:[#allocation10 + $0x80] sm:$0xff] }
 0x5bf   :  { %3823 = vmatpush3.msra.mxu1 %v1555_v27 }
 0x5c0   :  { %3824 = vmatprep.subr.mxu1 %v1570_v28 }
 0x5c1   :  { %3825 = vmatpush3.msra.mxu1 %v1554_v29 }
 0x5c2   :  { %3826 = vmatprep.subr.mxu1 %v1569_v2 }
 0x5c3   :  { %3827 = vmatpush3.msra.mxu1 %v1553_v30 }
 0x5c4   :  { %3828 = vmatprep.subr.mxu1 %v1568_v31 }
 0x5c5   :  { %3829 = vmatpush3.msra.mxu1 %v1552_v32 }
 0x5c6   :  { %3830 = vmatprep.subr.mxu1 %v1567_v33 }
 0x5c7   :  { %3831 = vmatpush3.msra.mxu1 %v1551_v34 }
 0x5c8   :  { %3832 = vmatprep.subr.mxu1 %v1566_v35 }
 0x5c9   :  { %3833 = vmatpush3.msra.mxu1 %v1550_v36 }
 0x5ca   :  { %3834 = vmatprep.subr.mxu1 %v1565_v37 }
 0x5cb   :  { %3835 = vmatpush3.msra.mxu1 %v1549_v38 }
 0x5cc   :  { %3836 = vmatprep.subr.mxu1 %v1564_v39 }
 0x5cd   :  { %3837 = vmatpush3.msra.mxu1 %v1548_v40 }
 0x5ce   :  { %3838 = vmatprep.subr.mxu1 %v1563_v41 }
 0x5cf   :  { %3839 = vmatpush3.msra.mxu1 %v1547_v42 }
 0x5d0   :  { %3840 = vmatprep.subr.mxu1 %v1562_v43 }
 0x5d1   :  { %3841 = vmatpush3.msra.mxu1 %v1546_v44 }
 0x5d2   :  { %3842 = vmatprep.subr.mxu1 %v1561_v45 }
 0x5d3   :  { %3843 = vmatpush3.msra.mxu1 %v1545_v46 }
 0x5d4   :  { %1642 = vmatmul.mubr.f32.vlgmr.msra.gmra.mxu1 %v4900_v26  ;;  %v1795_v26 = vld [vmem:[#allocation10 + $0x78] sm:$0xff]  ;;  %4129 = vmatprep.subr.mxu1 %v1891_v56 }
 0x5d5   :  { %4130 = vmatpush3.msra.mxu1 %v1891_v56 }
 0x5d6   :  { %4131 = vmatprep.subr.mxu1 %v1890_v58 }
 0x5d7   :  { %4132 = vmatpush3.msra.mxu1 %v1890_v58 }
 0x5d8   :  { %4133 = vmatprep.subr.mxu1 %v1889_v60 }
 0x5d9   :  { %4134 = vmatpush3.msra.mxu1 %v1889_v60 }
 0x5da   :  { %4135 = vmatprep.subr.mxu1 %v1888_v0 }
 0x5db   :  { %4136 = vmatpush3.msra.mxu1 %v1888_v0  ;;  %v1968_v0 = vld [vmem:[#allocation9 + $0x20] sm:$0xff] }
 0x5dc   :  { %4137 = vmatprep.subr.mxu1 %v1887_v63 }
 0x5dd   :  { %4138 = vmatpush3.msra.mxu1 %v1887_v63 }
 0x5de   :  { %4139 = vmatprep.subr.mxu1 %v1886_v3 }
 0x5df   :  { %4140 = vmatpush3.msra.mxu1 %v1886_v3 }
 0x5e0   :  { %4141 = vmatprep.subr.mxu1 %v1885_v5 }
 0x5e1   :  { %4142 = vmatpush3.msra.mxu1 %v1885_v5  ;;  %v1969_v5 = vld [vmem:[#allocation9 + $0x28] sm:$0xff] }
 0x674   :  { %v4088_v48 = vpop.f32.mrf.mxu1 }
 0x675   :  { %v4923_v50 = vadd.f32 %v4088_v48, %v4913_v7  ;;  %v1884_v7 = vld [vmem:[#allocation10 + $0xc0] sm:$0xff] }
 0x676   :  { %v1533_v22 = vpop.f32.mrf.mxu1  ;;  %4143 = vmatprep.subr.mxu1 %v1884_v7 }
 0x677   :  { %v4925_v51 = vadd.f32 %v1533_v22, %v1347_v49  ;;  %4144 = vmatpush3.msra.mxu1 %v1884_v7  ;;  %v2183_v7 = vld [vmem:[#allocation10 + $0x178] sm:$0xff] }
 0x678   :  { %4145 = vmatprep.subr.mxu1 %v1883_v9 }
 0x679   :  { %4146 = vmatpush3.msra.mxu1 %v1883_v9  ;;  %v1873_v9 = vld [vmem:[#allocation9 + $0x10] sm:$0xff] }
 0x67a   :  { %4147 = vmatprep.subr.mxu1 %v1882_v11 }
 0x67b   :  { %4148 = vmatpush3.msra.mxu1 %v1882_v11  ;;  %v1874_v11 = vld [vmem:[#allocation9 + $0x18] sm:$0xff] }
 0x67c   :  { %4149 = vmatprep.subr.mxu1 %v1881_v13 }
 0x67d   :  { %4150 = vmatpush3.msra.mxu1 %v1881_v13  ;;  %v2181_v13 = vld [vmem:[#allocation10 + $0x168] sm:$0xff] }
 0x67e   :  { %4151 = vmatprep.subr.mxu1 %v1880_v15 }
 0x67f   :  { %4152 = vmatpush3.msra.mxu1 %v1880_v15  ;;  %v2179_v15 = vld [vmem:[#allocation10 + $0x158] sm:$0xff] }
 0x680   :  { %4153 = vmatprep.subr.mxu1 %v1879_v17 }
 0x681   :  { %4154 = vmatpush3.msra.mxu1 %v1879_v17  ;;  %v2177_v17 = vld [vmem:[#allocation10 + $0x148] sm:$0xff] }
 0x682   :  { %4155 = vmatprep.subr.mxu1 %v1878_v19 }
 0x683   :  { %4156 = vmatpush3.msra.mxu1 %v1878_v19  ;;  %v2175_v19 = vld [vmem:[#allocation10 + $0x138] sm:$0xff] }
 0x684   :  { %4157 = vmatprep.subr.mxu1 %v1877_v23 }
 0x685   :  { %4158 = vmatpush3.msra.mxu1 %v1877_v23  ;;  %v2173_v23 = vld [vmem:[#allocation10 + $0x128] sm:$0xff] }
 0x686   :  { %4159 = vmatprep.subr.mxu1 %v1876_v25 }
 0x687   :  { %4160 = vmatpush3.msra.mxu1 %v1876_v25  ;;  %v2171_v25 = vld [vmem:[#allocation10 + $0x118] sm:$0xff] }
 0x694   :  { %v3844_v52 = vpop.f32.mrf.mxu1 }
 0x696   :  { %v3845_v53 = vpop.f32.mrf.mxu1 }
 0x697   :  { %v3846_v54 = vadd.f32 %v3845_v53, %v3844_v52  ;;  %v3646_v53 = vld [vmem:[%s5105_s7] ss:$0 sm:$0xff] }
 0x699   :  { %4089 = vmatprep.subr.mxu0 %v3846_v54 }
 0x69a   :  { %4090 = vmatpush3.msra.mxu0 %v3846_v54 }
 0x69b   :  { %4092 = vmatmul.mubr.msk.f32.vlgmr.msra.gmra.mxu0 %vm1192_vm2, %v1649_v55  ;;  %4094 = vmatprep.subr.mxu0 %v1795_v26 }
 0x69c   :  { %4095 = vmatpush3.msra.mxu0 %v1795_v26  ;;  %v3647_v26 = vld [vmem:[%s5106_s8] ss:$0 sm:$0xff] }
 0x69d   :  { %4096 = vmatprep.subr.mxu0 %v1794_v57 }
 0x69e   :  { %4097 = vmatpush3.msra.mxu0 %v1794_v57 }
 0x69f   :  { %4098 = vmatprep.subr.mxu0 %v1793_v59 }
 0x6a0   :  { %4099 = vmatpush3.msra.mxu0 %v1793_v59 }
 0x6a1   :  { %4100 = vmatprep.subr.mxu0 %v1792_v61 }
 0x6a2   :  { %4101 = vmatpush3.msra.mxu0 %v1792_v61 }
 0x6a3   :  { %4102 = vmatprep.subr.mxu0 %v1791_v62 }
 0x6a4   :  { %4103 = vmatpush3.msra.mxu0 %v1791_v62  ;;  %v1871_v62 = vld [vmem:[#allocation9] sm:$0xff] }
 0x6a5   :  { %4104 = vmatprep.subr.mxu0 %v1790_v1 }
 0x6a6   :  { %4105 = vmatpush3.msra.mxu0 %v1790_v1 }
 0x6a7   :  { %4106 = vmatprep.subr.mxu0 %v1789_v4 }
 0x6a8   :  { %4107 = vmatpush3.msra.mxu0 %v1789_v4 }
 0x6a9   :  { %4108 = vmatprep.subr.mxu0 %v1788_v6 }
 0x6aa   :  { %4109 = vmatpush3.msra.mxu0 %v1788_v6  ;;  %v1872_v6 = vld [vmem:[#allocation9 + $0x8] sm:$0xff] }
 0x6ab   :  { %4110 = vmatprep.subr.mxu0 %v1787_v8 }
 0x6ac   :  { %4111 = vmatpush3.msra.mxu0 %v1787_v8  ;;  %v1970_v8 = vld [vmem:[#allocation9 + $0x30] sm:$0xff] }
 0x6ad   :  { %4112 = vmatprep.subr.mxu0 %v1786_v10 }
 0x6ae   :  { %4113 = vmatpush3.msra.mxu0 %v1786_v10  ;;  %v2182_v10 = vld [vmem:[#allocation10 + $0x170] sm:$0xff] }
 0x6af   :  { %4114 = vmatprep.subr.mxu0 %v1785_v12 }
 0x6b0   :  { %4115 = vmatpush3.msra.mxu0 %v1785_v12  ;;  %v1971_v12 = vld [vmem:[#allocation9 + $0x38] sm:$0xff] }
 0x6b1   :  { %4116 = vmatprep.subr.mxu0 %v1784_v14 }
 0x6b2   :  { %4117 = vmatpush3.msra.mxu0 %v1784_v14  ;;  %v2180_v14 = vld [vmem:[#allocation10 + $0x160] sm:$0xff] }
 0x6b3   :  { %4118 = vmatprep.subr.mxu0 %v1783_v16 }
 0x6b4   :  { %4119 = vmatpush3.msra.mxu0 %v1783_v16  ;;  %v2178_v16 = vld [vmem:[#allocation10 + $0x150] sm:$0xff] }
 0x6b5   :  { %4120 = vmatprep.subr.mxu0 %v1782_v18 }
 0x6b6   :  { %4121 = vmatpush3.msra.mxu0 %v1782_v18  ;;  %v2176_v18 = vld [vmem:[#allocation10 + $0x140] sm:$0xff] }
 0x6b7   :  { %4122 = vmatprep.subr.mxu0 %v1781_v21 }
 0x6b8   :  { %4123 = vmatpush3.msra.mxu0 %v1781_v21  ;;  %v2174_v21 = vld [vmem:[#allocation10 + $0x130] sm:$0xff] }
 0x6b9   :  { %4124 = vmatprep.subr.mxu0 %v1780_v24 }
 0x6ba   :  { %4125 = vmatpush3.msra.mxu0 %v1780_v24  ;;  %v2172_v24 = vld [vmem:[#allocation10 + $0x120] sm:$0xff] }
 0x75b   :  { %v4093_v27 = vpop.f32.mrf.mxu0 }
 0x75c   :  { %v1732_v28 = vadd.f32 %v4093_v27, %v4923_v50  ;;  %v2170_v27 = vld [vmem:[#allocation10 + $0x110] sm:$0xff] }
 0x75d   :  { %v1722_v29 = vpop.f32.mrf.mxu0 }
 0x75e   :  { %v1731_v2 = vadd.f32 %v1722_v29, %v4925_v51  ;;  %v1742_v30 = vmul.f32 %v1732_v28, %v1732_v28  ;;  %v2168_v29 = vld [vmem:[#allocation10 + $0x100] sm:$0xff] }
 0x760   :  { %v1733_v31 = vadd.f32 %v1732_v28, %v1731_v2  ;;  %v1741_v32 = vmul.f32 %v1731_v2, %v1731_v2 }
 0x762   :  { %v1734_v33 = vrot.slane %v1733_v31, 4  ;;  %v1743_v34 = vadd.f32 %v1742_v30, %v1741_v32 }
 0x764   :  { %v1735_v35 = vadd.f32 %v1734_v33, %v1733_v31  ;;  %v1744_v36 = vrot.slane %v1743_v34, 4 }
 0x766   :  { %v1736_v37 = vrot.slane %v1735_v35, 2  ;;  %v1745_v38 = vadd.f32 %v1744_v36, %v1743_v34 }
 0x768   :  { %v1737_v39 = vadd.f32 %v1736_v37, %v1735_v35  ;;  %v1746_v40 = vrot.slane %v1745_v38, 2 }
 0x76a   :  { %v1738_v41 = vrot.slane %v1737_v39, 1  ;;  %v1747_v42 = vadd.f32 %v1746_v40, %v1745_v38 }
 0x76c   :  { %v1739_v43 = vadd.f32 %v1738_v41, %v1737_v39  ;;  %v1748_v44 = vrot.slane %v1747_v42, 1 }
 0x76e   :  { %v1740_v45 = vmul.f32 0.0625, %v1739_v43  ;;  %v1749_v46 = vadd.f32 %v1748_v44, %v1747_v42  ;;  %v2261_v42 = vld [vmem:[#allocation9 + $0x48] sm:$0xff]  ;;  %v2381_v43 = vld [vmem:[#allocation10 + $0x1f8] sm:$0xff]  ;;  %v2262_v44 = vld [vmem:[#allocation9 + $0x50] sm:$0xff] }
 0x770   :  { %v1750_v20 = vmul.f32 0.0625, %v1749_v46  ;;  %v1751_v47 = vmul.f32 %v1740_v45, %v1740_v45  ;;  %v1756_v48 = vsub.f32 %v1731_v2, %v1740_v45  ;;  %v1757_v49 = vsub.f32 %v1732_v28, %v1740_v45  ;;  %v2169_v28 = vld [vmem:[#allocation10 + $0x108] sm:$0xff]  ;;  %v2260_v2 = vld [vmem:[#allocation9 + $0x40] sm:$0xff]  ;;  %v2380_v45 = vld [vmem:[#allocation10 + $0x1f0] sm:$0xff] }
 0x771   :  { %v2263_v46 = vld [vmem:[#allocation9 + $0x58] sm:$0xff] }
 0x772   :  { %v1752_v50 = vsub.f32 %v1750_v20, %v1751_v47  ;;  %v2379_v20 = vld [vmem:[#allocation10 + $0x1e8] sm:$0xff]  ;;  %v2378_v47 = vld [vmem:[#allocation10 + $0x1e0] sm:$0xff] }
 0x774   :  { %v1753_v22 = vmax.f32 %v1752_v50, 0.0  ;;  %v2375_v50 = vld [vmem:[#allocation10 + $0x1c8] sm:$0xff] }
 0x776   :  { %v1754_v51 = vadd.f32 1e-05, %v1753_v22  ;;  %v2374_v22 = vld [vmem:[#allocation10 + $0x1c0] sm:$0xff] }
 0x778   :  { %4523 = vrsqrt.f32 %v1754_v51  ;;  %v2373_v51 = vld [vmem:[#allocation10 + $0x1b8] sm:$0xff] }
 0x785   :  { %v4524_v52 = vpop.eup %4523 }
 0x786   :  { %v1758_v54 = vmul.f32 %v4524_v52, %v1756_v48  ;;  %v1759_v55 = vmul.f32 %v4524_v52, %v1757_v49  ;;  %v2377_v48 = vld [vmem:[#allocation10 + $0x1d8] sm:$0xff]  ;;  %v2376_v49 = vld [vmem:[#allocation10 + $0x1d0] sm:$0xff] }
 0x787   :  { %v2372_v52 = vld [vmem:[#allocation10 + $0x1b0] sm:$0xff] }
 0x788   :  { %v1767_v56 = vmul.f32 %v3646_v53, %v1758_v54  ;;  %v1768_v57 = vmul.f32 %v3646_v53, %v1759_v55  ;;  %v2371_v53 = vld [vmem:[#allocation10 + $0x1a8] sm:$0xff]  ;;  %v2370_v54 = vld [vmem:[#allocation10 + $0x1a0] sm:$0xff]  ;;  %v2369_v55 = vld [vmem:[#allocation10 + $0x198] sm:$0xff] }
 0x78a   :  { %v1776_v58 = vadd.f32 %v3647_v26, %v1767_v56  ;;  %v1777_v59 = vadd.f32 %v3647_v26, %v1768_v57  ;;  %v2368_v26 = vld [vmem:[#allocation10 + $0x190] sm:$0xff]  ;;  %v2367_v56 = vld [vmem:[#allocation10 + $0x188] sm:$0xff]  ;;  %v2366_v57 = vld [vmem:[#allocation10 + $0x180] sm:$0xff] }
 0x78c   :  { %v4936_v60 = vmax.f32 %v1776_v58, 0.0  ;;  %v4938_v61 = vmax.f32 %v1777_v59, 0.0  ;;  %v2458_v58 = vld [vmem:[#allocation9 + $0x60] sm:$0xff] }
 0x78e   :  { %4126 = vmatprep.mubr.f32.mxu0 %v4936_v60  ;;  %4161 = vmatprep.mubr.f32.mxu1 %v4936_v60 }
 0x78f   :  { %4127 = vmatmul.mubr.f32.vlgmr.msra.gmra.mxu0 %v4938_v61  ;;  %4162 = vmatmul.mubr.f32.vlgmr.msra.gmra.mxu1 %v4938_v61 }
 0x790   :  { %4168 = vmatprep.mubr.msk.f32.mxu0 %vm1972_vm3, %v1968_v0  ;;  %4178 = vmatprep.mubr.msk.f32.mxu1 %vm1972_vm3, %v1871_v62 }
 0x84f   :  { %v4128_v63 = vpop.f32.mrf.mxu0  ;;  %v4163_v1 = vpop.f32.mrf.mxu1 }
 0x850   :  { %4164 = vmatprep.subr.mxu0 %v4163_v1  ;;  %4174 = vmatprep.subr.mxu1 %v4128_v63 }
 0x851   :  { %v1862_v3 = vpop.f32.mrf.mxu0  ;;  %v1958_v4 = vpop.f32.mrf.mxu1  ;;  %4165 = vmatpush3.msra.mxu0 %v4163_v1  ;;  %4175 = vmatpush3.msra.mxu1 %v4128_v63 }
 0x852   :  { %4166 = vmatprep.subr.mxu0 %v1958_v4  ;;  %4176 = vmatprep.subr.mxu1 %v1862_v3 }
 0x853   :  { %4167 = vmatpush3.msra.mxu0 %v1958_v4  ;;  %4177 = vmatpush3.msra.mxu1 %v1862_v3 }
 0x854   :  { %4169 = vmatmul.mubr.msk.f32.vlgmr.msra.gmra.mxu0 %vm1972_vm3, %v1969_v5  ;;  %4179 = vmatmul.mubr.msk.f32.vlgmr.msra.gmra.mxu1 %vm1972_vm3, %v1872_v6 }
 0x855   :  { %4184 = vmatprep.subr.mxu0 %v2183_v7  ;;  %4171 = vmatprep.mubr.msk.f32.mxu0 %vm1972_vm3, %v1970_v8  ;;  %v2459_v8 = vld [vmem:[#allocation9 + $0x68] sm:$0xff] }
 0x856   :  { %4185 = vmatpush3.msra.mxu0 %v2183_v7  ;;  %4181 = vmatprep.mubr.msk.f32.mxu1 %vm1972_vm3, %v1873_v9  ;;  %v2460_v9 = vld [vmem:[#allocation9 + $0x70] sm:$0xff] }
 0x857   :  { %4186 = vmatprep.subr.mxu0 %v2182_v10 }
 0x858   :  { %4187 = vmatpush3.msra.mxu0 %v2182_v10  ;;  %4182 = vmatmul.mubr.msk.f32.gmra.mxu1 %vm1972_vm3, %v1874_v11  ;;  %v2461_v10 = vld [vmem:[#allocation9 + $0x78] sm:$0xff] }
 0x859   :  { %4172 = vmatmul.mubr.msk.f32.gmra.mxu0 %vm1972_vm3, %v1971_v12  ;;  %4188 = vmatprep.subr.mxu0 %v2181_v13  ;;  %v2641_v11 = vld [vmem:[#allocation13 + $0x78] sm:$0xff] }
 0x85a   :  { %4189 = vmatpush3.msra.mxu0 %v2181_v13  ;;  %4216 = vmatprep.mubr.f32.mxu0 %v4936_v60  ;;  %v2751_v12 = vld [vmem:[#allocation13 + $0xf8] sm:$0xff]  ;;  %v2640_v13 = vld [vmem:[#allocation13 + $0x70] sm:$0xff] }
 0x85b   :  { %4190 = vmatprep.subr.mxu0 %v2180_v14  ;;  %4223 = vmatprep.mubr.msk.f32.mxu1 %vm1972_vm3, %v2260_v2  ;;  %v2633_v2 = vld [vmem:[#allocation13 + $0x38] sm:$0xff] }
 0x85c   :  { %4191 = vmatpush3.msra.mxu0 %v2180_v14  ;;  %v2750_v14 = vld [vmem:[#allocation13 + $0xf0] sm:$0xff] }
 0x85d   :  { %4192 = vmatprep.subr.mxu0 %v2179_v15 }
 0x85e   :  { %4193 = vmatpush3.msra.mxu0 %v2179_v15  ;;  %v2639_v15 = vld [vmem:[#allocation13 + $0x68] sm:$0xff] }
 0x85f   :  { %4194 = vmatprep.subr.mxu0 %v2178_v16 }
 0x860   :  { %4195 = vmatpush3.msra.mxu0 %v2178_v16  ;;  %v2749_v16 = vld [vmem:[#allocation13 + $0xe8] sm:$0xff] }
 0x861   :  { %4196 = vmatprep.subr.mxu0 %v2177_v17 }
 0x862   :  { %4197 = vmatpush3.msra.mxu0 %v2177_v17  ;;  %v2638_v17 = vld [vmem:[#allocation13 + $0x60] sm:$0xff] }
 0x863   :  { %4198 = vmatprep.subr.mxu0 %v2176_v18 }
 0x864   :  { %4199 = vmatpush3.msra.mxu0 %v2176_v18  ;;  %v2748_v18 = vld [vmem:[#allocation13 + $0xe0] sm:$0xff] }
 0x865   :  { %4200 = vmatprep.subr.mxu0 %v2175_v19 }
 0x866   :  { %4201 = vmatpush3.msra.mxu0 %v2175_v19  ;;  %v2637_v19 = vld [vmem:[#allocation13 + $0x58] sm:$0xff] }
 0x867   :  { %4202 = vmatprep.subr.mxu0 %v2174_v21 }
 0x868   :  { %4203 = vmatpush3.msra.mxu0 %v2174_v21  ;;  %v2747_v21 = vld [vmem:[#allocation13 + $0xd8] sm:$0xff] }
 0x869   :  { %4204 = vmatprep.subr.mxu0 %v2173_v23 }
 0x86a   :  { %4205 = vmatpush3.msra.mxu0 %v2173_v23  ;;  %v2636_v23 = vld [vmem:[#allocation13 + $0x50] sm:$0xff] }
 0x86b   :  { %4206 = vmatprep.subr.mxu0 %v2172_v24 }
 0x86c   :  { %4207 = vmatpush3.msra.mxu0 %v2172_v24  ;;  %v2746_v24 = vld [vmem:[#allocation13 + $0xd0] sm:$0xff] }
 0x86d   :  { %4208 = vmatprep.subr.mxu0 %v2171_v25 }
 0x86e   :  { %4209 = vmatpush3.msra.mxu0 %v2171_v25  ;;  %v2635_v25 = vld [vmem:[#allocation13 + $0x48] sm:$0xff] }
 0x86f   :  { %4210 = vmatprep.subr.mxu0 %v2170_v27 }
 0x870   :  { %4211 = vmatpush3.msra.mxu0 %v2170_v27  ;;  %v2745_v27 = vld [vmem:[#allocation13 + $0xc8] sm:$0xff] }
 0x871   :  { %4212 = vmatprep.subr.mxu0 %v2169_v28 }
 0x872   :  { %4213 = vmatpush3.msra.mxu0 %v2169_v28  ;;  %v2634_v28 = vld [vmem:[#allocation13 + $0x40] sm:$0xff] }
 0x873   :  { %4214 = vmatprep.subr.mxu0 %v2168_v29 }
 0x874   :  { %4215 = vmatpush3.msra.mxu0 %v2168_v29  ;;  %v2744_v29 = vld [vmem:[#allocation13 + $0xc0] sm:$0xff] }
 0x875   :  { %4217 = vmatmul.mubr.f32.vlgmr.msra.gmra.mxu0 %v4938_v61 }
 0x876   :  { %4268 = vmatprep.mubr.msk.f32.mxu0 %vm1972_vm3, %v2458_v58 }
 0x914   :  { %v4170_v30 = vpop.f32.mrf.mxu0  ;;  %v4180_v31 = vpop.f32.mrf.mxu1 }
 0x915   :  { %v4955_v32 = vadd.f32 %v4180_v31, %v4170_v30  ;;  %v2743_v30 = vld [vmem:[#allocation13 + $0xb8] sm:$0xff]  ;;  %v2632_v31 = vld [vmem:[#allocation13 + $0x30] sm:$0xff] }
 0x916   :  { %v2051_v33 = vpop.f32.mrf.mxu0  ;;  %v2148_v34 = vpop.f32.mrf.mxu1 }
 0x917   :  { %v4957_v35 = vadd.f32 %v2148_v34, %v2051_v33  ;;  %v2631_v33 = vld [vmem:[#allocation13 + $0x28] sm:$0xff] }
 0x918   :  { %v4183_v37 = vpop.f32.mrf.mxu1  ;;  %v2741_v34 = vld [vmem:[#allocation13 + $0xa8] sm:$0xff] }
 0x919   :  { %v4173_v36 = vpop.f32.mrf.mxu0 }
 0x91a   :  { %v4959_v38 = vadd.f32 %v4183_v37, %v4173_v36  ;;  %v2158_v59 = vpop.f32.mrf.mxu1  ;;  %v2740_v36 = vld [vmem:[#allocation13 + $0xa0] sm:$0xff]  ;;  %v2629_v37 = vld [vmem:[#allocation13 + $0x18] sm:$0xff] }
 0x91b   :  { %v4961_v39 = vpop.f32.mrf.mxu0 }
 0x91c   :  { %v2159_v3 = vadd.f32 %v2158_v59, %v4961_v39  ;;  %v2628_v39 = vld [vmem:[#allocation13 + $0x10] sm:$0xff] }
 0x935   :  { %v4218_v40 = vpop.f32.mrf.mxu0 }
 0x936   :  { %4219 = vmatprep.subr.mxu1 %v4218_v40 }
 0x937   :  { %v2250_v41 = vpop.f32.mrf.mxu0  ;;  %4220 = vmatpush3.msra.mxu1 %v4218_v40  ;;  %v2738_v40 = vld [vmem:[#allocation13 + $0x90] sm:$0xff] }
 0x938   :  { %4221 = vmatprep.subr.mxu1 %v2250_v41 }
 0x939   :  { %4222 = vmatpush3.msra.mxu1 %v2250_v41  ;;  %v2627_v41 = vld [vmem:[#allocation13 + $0x8] sm:$0xff] }
 0x93a   :  { %4224 = vmatmul.mubr.msk.f32.vlgmr.msra.gmra.mxu1 %vm1972_vm3, %v2261_v42  ;;  %4229 = vmatprep.subr.mxu1 %v2381_v43  ;;  %v2737_v42 = vld [vmem:[#allocation13 + $0x88] sm:$0xff] }
 0x93b   :  { %4230 = vmatpush3.msra.mxu1 %v2381_v43  ;;  %4226 = vmatprep.mubr.msk.f32.mxu1 %vm1972_vm3, %v2262_v44  ;;  %v2626_v43 = vld [vmem:[#allocation13] sm:$0xff] }
 0x93c   :  { %4231 = vmatprep.subr.mxu1 %v2380_v45  ;;  %v2736_v44 = vld [vmem:[#allocation13 + $0x80] sm:$0xff] }
 0x93d   :  { %4232 = vmatpush3.msra.mxu1 %v2380_v45 }
 0x93e   :  { %4227 = vmatmul.mubr.msk.f32.gmra.mxu1 %vm1972_vm3, %v2263_v46  ;;  %4233 = vmatprep.subr.mxu1 %v2379_v20 }
 0x93f   :  { %4234 = vmatpush3.msra.mxu1 %v2379_v20  ;;  %4261 = vmatprep.mubr.f32.mxu1 %v4936_v60 }
 0x940   :  { %4235 = vmatprep.subr.mxu1 %v2378_v47 }
 0x941   :  { %4236 = vmatpush3.msra.mxu1 %v2378_v47 }
 0x942   :  { %4237 = vmatprep.subr.mxu1 %v2377_v48 }
 0x943   :  { %4238 = vmatpush3.msra.mxu1 %v2377_v48 }
 0x944   :  { %4239 = vmatprep.subr.mxu1 %v2376_v49 }
 0x945   :  { %4240 = vmatpush3.msra.mxu1 %v2376_v49 }
 0x946   :  { %4241 = vmatprep.subr.mxu1 %v2375_v50 }
 0x947   :  { %4242 = vmatpush3.msra.mxu1 %v2375_v50 }
 0x948   :  { %4243 = vmatprep.subr.mxu1 %v2374_v22 }
 0x949   :  { %4244 = vmatpush3.msra.mxu1 %v2374_v22 }
 0x94a   :  { %4245 = vmatprep.subr.mxu1 %v2373_v51 }
 0x94b   :  { %4246 = vmatpush3.msra.mxu1 %v2373_v51 }
 0x94c   :  { %4247 = vmatprep.subr.mxu1 %v2372_v52 }
 0x94d   :  { %4248 = vmatpush3.msra.mxu1 %v2372_v52 }
 0x94e   :  { %4249 = vmatprep.subr.mxu1 %v2371_v53 }
 0x94f   :  { %4250 = vmatpush3.msra.mxu1 %v2371_v53 }
 0x950   :  { %4251 = vmatprep.subr.mxu1 %v2370_v54 }
 0x951   :  { %4252 = vmatpush3.msra.mxu1 %v2370_v54 }
 0x952   :  { %4253 = vmatprep.subr.mxu1 %v2369_v55 }
 0x953   :  { %4254 = vmatpush3.msra.mxu1 %v2369_v55 }
 0x954   :  { %4255 = vmatprep.subr.mxu1 %v2368_v26 }
 0x955   :  { %4256 = vmatpush3.msra.mxu1 %v2368_v26 }
 0x956   :  { %4257 = vmatprep.subr.mxu1 %v2367_v56 }
 0x957   :  { %4258 = vmatpush3.msra.mxu1 %v2367_v56 }
 0x958   :  { %4259 = vmatprep.subr.mxu1 %v2366_v57 }
 0x959   :  { %4260 = vmatpush3.msra.mxu1 %v2366_v57 }
 0x95a   :  { %4262 = vmatmul.mubr.f32.vlgmr.msra.gmra.mxu1 %v4938_v61  ;;  %4312 = vmatprep.subr.mxu1 %v2751_v12 }
 0x95b   :  { %4313 = vmatpush3.msra.mxu1 %v2751_v12 }
 0x95c   :  { %4314 = vmatprep.subr.mxu1 %v2750_v14 }
 0x95d   :  { %4315 = vmatpush3.msra.mxu1 %v2750_v14 }
 0x95e   :  { %4316 = vmatprep.subr.mxu1 %v2749_v16 }
 0x95f   :  { %4317 = vmatpush3.msra.mxu1 %v2749_v16 }
 0x960   :  { %4318 = vmatprep.subr.mxu1 %v2748_v18 }
 0x961   :  { %4319 = vmatpush3.msra.mxu1 %v2748_v18 }
 0x962   :  { %4320 = vmatprep.subr.mxu1 %v2747_v21 }
 0x963   :  { %4321 = vmatpush3.msra.mxu1 %v2747_v21  ;;  %v3664_v21 = vld [vmem:[%s5109_s11] ss:$0 sm:$0xff] }
 0x964   :  { %4322 = vmatprep.subr.mxu1 %v2746_v24 }
 0x965   :  { %4323 = vmatpush3.msra.mxu1 %v2746_v24 }
 0x966   :  { %4324 = vmatprep.subr.mxu1 %v2745_v27 }
 0x967   :  { %4325 = vmatpush3.msra.mxu1 %v2745_v27 }
 0x968   :  { %4326 = vmatprep.subr.mxu1 %v2744_v29 }
 0x969   :  { %4327 = vmatpush3.msra.mxu1 %v2744_v29 }
 0x96a   :  { %4328 = vmatprep.subr.mxu1 %v2743_v30 }
 0x96b   :  { %4329 = vmatpush3.msra.mxu1 %v2743_v30 }
 0x9fa   :  { %v4225_v60 = vpop.f32.mrf.mxu1 }
 0x9fb   :  { %v4970_v0 = vadd.f32 %v4225_v60, %v4955_v32  ;;  %v2742_v32 = vld [vmem:[#allocation13 + $0xb0] sm:$0xff] }
 0x9fc   :  { %v2342_v62 = vpop.f32.mrf.mxu1  ;;  %4330 = vmatprep.subr.mxu1 %v2742_v32 }
 0x9fd   :  { %v4973_v63 = vadd.f32 %v2342_v62, %v4957_v35  ;;  %4331 = vmatpush3.msra.mxu1 %v2742_v32  ;;  %v2630_v35 = vld [vmem:[#allocation13 + $0x20] sm:$0xff] }
 0x9fe   :  { %v4228_v1 = vpop.f32.mrf.mxu1  ;;  %4332 = vmatprep.subr.mxu1 %v2741_v34 }
 0x9ff   :  { %v4977_v4 = vadd.f32 %v4228_v1, %v4959_v38  ;;  %4333 = vmatpush3.msra.mxu1 %v2741_v34  ;;  %v2739_v38 = vld [vmem:[#allocation13 + $0x98] sm:$0xff] }
 0xa00   :  { %v2352_v5 = vpop.f32.mrf.mxu1  ;;  %4334 = vmatprep.subr.mxu1 %v2740_v36 }
 0xa01   :  { %v4979_v61 = vadd.f32 %v2352_v5, %v2159_v3  ;;  %4335 = vmatpush3.msra.mxu1 %v2740_v36 }
 0xa02   :  { %4336 = vmatprep.subr.mxu1 %v2739_v38 }
 0xa03   :  { %4337 = vmatpush3.msra.mxu1 %v2739_v38 }
 0xa04   :  { %4338 = vmatprep.subr.mxu1 %v2738_v40 }
 0xa05   :  { %4339 = vmatpush3.msra.mxu1 %v2738_v40  ;;  %v2838_v40 = vld [vmem:[#allocation12 + $0x40] sm:$0xff] }
 0xa06   :  { %4340 = vmatprep.subr.mxu1 %v2737_v42 }
 0xa07   :  { %4341 = vmatpush3.msra.mxu1 %v2737_v42 }
 0xa08   :  { %4342 = vmatprep.subr.mxu1 %v2736_v44 }
 0xa09   :  { %4343 = vmatpush3.msra.mxu1 %v2736_v44 }
 0xa1a   :  { %v4263_v6 = vpop.f32.mrf.mxu1 }
 0xa1b   :  { %4264 = vmatprep.subr.mxu0 %v4263_v6 }
 0xa1c   :  { %v2448_v7 = vpop.f32.mrf.mxu1  ;;  %4265 = vmatpush3.msra.mxu0 %v4263_v6 }
 0xa1d   :  { %4266 = vmatprep.subr.mxu0 %v2448_v7 }
 0xa1e   :  { %4267 = vmatpush3.msra.mxu0 %v2448_v7 }
 0xa1f   :  { %4269 = vmatmul.mubr.msk.f32.vlgmr.msra.gmra.mxu0 %vm1972_vm3, %v2459_v8  ;;  %4274 = vmatprep.subr.mxu0 %v2641_v11 }
 0xa20   :  { %4271 = vmatprep.mubr.msk.f32.mxu0 %vm1972_vm3, %v2460_v9  ;;  %4275 = vmatpush3.msra.mxu0 %v2641_v11 }
 0xa21   :  { %4276 = vmatprep.subr.mxu0 %v2640_v13 }
 0xa22   :  { %4277 = vmatpush3.msra.mxu0 %v2640_v13 }
 0xa23   :  { %4272 = vmatmul.mubr.msk.f32.gmra.mxu0 %vm1972_vm3, %v2461_v10  ;;  %4278 = vmatprep.subr.mxu0 %v2639_v15 }
 0xa24   :  { %4279 = vmatpush3.msra.mxu0 %v2639_v15 }
 0xa25   :  { %4280 = vmatprep.subr.mxu0 %v2638_v17 }
 0xa26   :  { %4281 = vmatpush3.msra.mxu0 %v2638_v17 }
 0xa27   :  { %4282 = vmatprep.subr.mxu0 %v2637_v19 }
 0xa28   :  { %4283 = vmatpush3.msra.mxu0 %v2637_v19 }
 0xa29   :  { %4284 = vmatprep.subr.mxu0 %v2636_v23 }
 0xa2a   :  { %4285 = vmatpush3.msra.mxu0 %v2636_v23 }
 0xa2b   :  { %4286 = vmatprep.subr.mxu0 %v2635_v25 }
 0xa2c   :  { %4287 = vmatpush3.msra.mxu0 %v2635_v25 }
 0xa2d   :  { %4288 = vmatprep.subr.mxu0 %v2634_v28 }
 0xa2e   :  { %4289 = vmatpush3.msra.mxu0 %v2634_v28  ;;  %v3665_v28 = vld [vmem:[%s5110_s12] ss:$0 sm:$0xff] }
 0xa2f   :  { %4290 = vmatprep.subr.mxu0 %v2633_v2 }
 0xa30   :  { %4291 = vmatpush3.msra.mxu0 %v2633_v2 }
 0xa31   :  { %4292 = vmatprep.subr.mxu0 %v2632_v31 }
 0xa32   :  { %4293 = vmatpush3.msra.mxu0 %v2632_v31 }
 0xa33   :  { %4294 = vmatprep.subr.mxu0 %v2631_v33 }
 0xa34   :  { %4295 = vmatpush3.msra.mxu0 %v2631_v33 }
 0xa35   :  { %4296 = vmatprep.subr.mxu0 %v2630_v35 }
 0xa36   :  { %4297 = vmatpush3.msra.mxu0 %v2630_v35 }
 0xa37   :  { %4298 = vmatprep.subr.mxu0 %v2629_v37 }
 0xa38   :  { %4299 = vmatpush3.msra.mxu0 %v2629_v37 }
 0xa39   :  { %4300 = vmatprep.subr.mxu0 %v2628_v39 }
 0xa3a   :  { %4301 = vmatpush3.msra.mxu0 %v2628_v39 }
 0xa3b   :  { %4302 = vmatprep.subr.mxu0 %v2627_v41 }
 0xa3c   :  { %4303 = vmatpush3.msra.mxu0 %v2627_v41  ;;  %v2727_v41 = vld [vmem:[#allocation12] sm:$0xff] }
 0xa3d   :  { %4304 = vmatprep.subr.mxu0 %v2626_v43 }
 0xa3e   :  { %4305 = vmatpush3.msra.mxu0 %v2626_v43 }
 0xadf   :  { %v4270_v45 = vpop.f32.mrf.mxu0 }
 0xae0   :  { %v2560_v46 = vadd.f32 %v4270_v45, %v4970_v0 }
 0xae1   :  { %v2540_v20 = vpop.f32.mrf.mxu0 }
 0xae2   :  { %v2559_v47 = vadd.f32 %v2540_v20, %v4973_v63  ;;  %v2574_v49 = vmul.f32 %v2560_v46, %v2560_v46 }
 0xae3   :  { %v4273_v48 = vpop.f32.mrf.mxu0 }
 0xae4   :  { %v2563_v50 = vadd.f32 %v2560_v46, %v2559_v47  ;;  %v2573_v22 = vmul.f32 %v2559_v47, %v2559_v47  ;;  %v2562_v53 = vadd.f32 %v4273_v48, %v4977_v4 }
 0xae5   :  { %v2550_v51 = vpop.f32.mrf.mxu0 }
 0xae6   :  { %v2577_v52 = vadd.f32 %v2574_v49, %v2573_v22  ;;  %v2561_v54 = vadd.f32 %v2550_v51, %v4979_v61  ;;  %v2576_v56 = vmul.f32 %v2562_v53, %v2562_v53  ;;  %v2839_v49 = vld [vmem:[#allocation12 + $0x48] sm:$0xff]  ;;  %v3121_v22 = vld [vmem:[#allocation13 + $0x178] sm:$0xff]  ;;  %v2840_v51 = vld [vmem:[#allocation12 + $0x50] sm:$0xff] }
 0xae8   :  { %v2564_v55 = vadd.f32 %v2563_v50, %v2561_v54  ;;  %v2575_v26 = vmul.f32 %v2561_v54, %v2561_v54  ;;  %v2728_v50 = vld [vmem:[#allocation12 + $0x8] sm:$0xff] }
 0xaea   :  { %v2565_v57 = vadd.f32 %v2564_v55, %v2562_v53  ;;  %v2578_v58 = vadd.f32 %v2577_v52, %v2575_v26  ;;  %v2729_v52 = vld [vmem:[#allocation12 + $0x10] sm:$0xff]  ;;  %v2841_v55 = vld [vmem:[#allocation12 + $0x58] sm:$0xff]  ;;  %v3119_v26 = vld [vmem:[#allocation13 + $0x168] sm:$0xff] }
 0xaec   :  { %v2566_v59 = vrot.slane %v2565_v57, 4  ;;  %v2579_v60 = vadd.f32 %v2578_v58, %v2576_v56  ;;  %v2842_v56 = vld [vmem:[#allocation12 + $0x60] sm:$0xff] }
 0xaed   :  { %v2731_v58 = vld [vmem:[#allocation12 + $0x20] sm:$0xff] }
 0xaee   :  { %v2567_v0 = vadd.f32 %v2566_v59, %v2565_v57  ;;  %v2580_v62 = vrot.slane %v2579_v60, 4  ;;  %v3118_v57 = vld [vmem:[#allocation13 + $0x160] sm:$0xff]  ;;  %v2732_v59 = vld [vmem:[#allocation12 + $0x28] sm:$0xff] }
 0xaf0   :  { %v2568_v63 = vrot.slane %v2567_v0, 2  ;;  %v2581_v1 = vadd.f32 %v2580_v62, %v2579_v60  ;;  %v2843_v60 = vld [vmem:[#allocation12 + $0x68] sm:$0xff]  ;;  %v2844_v62 = vld [vmem:[#allocation12 + $0x70] sm:$0xff] }
 0xaf2   :  { %v2569_v3 = vadd.f32 %v2568_v63, %v2567_v0  ;;  %v2582_v5 = vrot.slane %v2581_v1, 2  ;;  %v3117_v0 = vld [vmem:[#allocation13 + $0x158] sm:$0xff]  ;;  %v3116_v63 = vld [vmem:[#allocation13 + $0x150] sm:$0xff] }
 0xaf4   :  { %v2570_v6 = vrot.slane %v2569_v3, 1  ;;  %v2583_v7 = vadd.f32 %v2582_v5, %v2581_v1  ;;  %v2733_v1 = vld [vmem:[#allocation12 + $0x30] sm:$0xff]  ;;  %v2845_v5 = vld [vmem:[#allocation12 + $0x78] sm:$0xff] }
 0xaf6   :  { %v2571_v8 = vadd.f32 %v2570_v6, %v2569_v3  ;;  %v2584_v9 = vrot.slane %v2583_v7, 1  ;;  %v2734_v3 = vld [vmem:[#allocation12 + $0x38] sm:$0xff]  ;;  %v3115_v6 = vld [vmem:[#allocation13 + $0x148] sm:$0xff] }
 0xaf8   :  { %v2572_v4 = vmul.f32 0.03125, %v2571_v8  ;;  %v2585_v10 = vadd.f32 %v2584_v9, %v2583_v7  ;;  %v3114_v7 = vld [vmem:[#allocation13 + $0x140] sm:$0xff]  ;;  %v3113_v8 = vld [vmem:[#allocation13 + $0x138] sm:$0xff]  ;;  %v3112_v9 = vld [vmem:[#allocation13 + $0x130] sm:$0xff] }
 0xafa   :  { %v2586_v61 = vmul.f32 0.03125, %v2585_v10  ;;  %v2587_v11 = vmul.f32 %v2572_v4, %v2572_v4  ;;  %v2594_v12 = vsub.f32 %v2561_v54, %v2572_v4  ;;  %v2592_v13 = vsub.f32 %v2559_v47, %v2572_v4  ;;  %v2730_v54 = vld [vmem:[#allocation12 + $0x18] sm:$0xff]  ;;  %v3110_v10 = vld [vmem:[#allocation13 + $0x120] sm:$0xff] }
 0xafb   :  { %v2593_v14 = vsub.f32 %v2560_v46, %v2572_v4  ;;  %v2595_v15 = vsub.f32 %v2562_v53, %v2572_v4  ;;  %v3120_v53 = vld [vmem:[#allocation13 + $0x170] sm:$0xff]  ;;  %v3111_v4 = vld [vmem:[#allocation13 + $0x128] sm:$0xff] }
 0xafc   :  { %v2588_v16 = vsub.f32 %v2586_v61, %v2587_v11  ;;  %v3109_v61 = vld [vmem:[#allocation13 + $0x118] sm:$0xff]  ;;  %v3108_v11 = vld [vmem:[#allocation13 + $0x110] sm:$0xff] }
 0xafe   :  { %v2589_v17 = vmax.f32 %v2588_v16, 0.0 }
 0xb00   :  { %v2590_v18 = vadd.f32 1e-05, %v2589_v17 }
 0xb02   :  { %4525 = vrsqrt.f32 %v2590_v18 }
 0xb0f   :  { %v4526_v19 = vpop.eup %4525 }
 0xb10   :  { %v2598_v23 = vmul.f32 %v4526_v19, %v2594_v12  ;;  %v2596_v24 = vmul.f32 %v4526_v19, %v2592_v13  ;;  %v2597_v25 = vmul.f32 %v4526_v19, %v2593_v14  ;;  %v2599_v27 = vmul.f32 %v4526_v19, %v2595_v15  ;;  %v3107_v12 = vld [vmem:[#allocation13 + $0x108] sm:$0xff]  ;;  %v3106_v13 = vld [vmem:[#allocation13 + $0x100] sm:$0xff] }
 0xb11   :  { %v3208_v14 = vld [vmem:[#allocation12 + $0x80] sm:$0xff] }
 0xb12   :  { %v2609_v29 = vmul.f32 %v3664_v21, %v2598_v23  ;;  %v2607_v2 = vmul.f32 %v3664_v21, %v2596_v24  ;;  %v2608_v30 = vmul.f32 %v3664_v21, %v2597_v25  ;;  %v2610_v31 = vmul.f32 %v3664_v21, %v2599_v27 }
 0xb14   :  { %v2618_v32 = vadd.f32 %v3665_v28, %v2607_v2  ;;  %v2619_v33 = vadd.f32 %v3665_v28, %v2608_v30  ;;  %v2620_v34 = vadd.f32 %v3665_v28, %v2609_v29  ;;  %v2621_v37 = vadd.f32 %v3665_v28, %v2610_v31 }
 0xb16   :  { %v4994_v35 = vmax.f32 %v2618_v32, 0.0  ;;  %v4996_v36 = vmax.f32 %v2619_v33, 0.0  ;;  %v5000_v38 = vmax.f32 %v2620_v34, 0.0  ;;  %v5006_v39 = vmax.f32 %v2621_v37, 0.0 }
 0xb18   :  { %4306 = vmatprep.mubr.f32.mxu0 %v4994_v35  ;;  %4344 = vmatprep.mubr.f32.mxu1 %v4994_v35 }
 0xb19   :  { %4307 = vmatmul.mubr.f32.vlgmr.msra.gmra.mxu0 %v4996_v36  ;;  %4345 = vmatmul.mubr.f32.vlgmr.msra.gmra.mxu1 %v4996_v36 }
 0xb1a   :  { %4309 = vmatprep.mubr.f32.mxu0 %v5000_v38  ;;  %4347 = vmatprep.mubr.f32.mxu1 %v5000_v38 }
 0xb1d   :  { %4310 = vmatmul.mubr.f32.gmra.mxu0 %v5006_v39  ;;  %4348 = vmatmul.mubr.f32.gmra.mxu1 %v5006_v39 }
 0xb1e   :  { %4358 = vmatprep.mubr.msk.f32.mxu0 %vm2846_vm4, %v2838_v40  ;;  %4378 = vmatprep.mubr.msk.f32.mxu1 %vm2846_vm4, %v2727_v41 }
 0xbd9   :  { %v4308_v42 = vpop.f32.mrf.mxu0  ;;  %v4346_v43 = vpop.f32.mrf.mxu1 }
 0xbdb   :  { %v2708_v44 = vpop.f32.mrf.mxu0  ;;  %v2818_v45 = vpop.f32.mrf.mxu1 }
 0xbdd   :  { %v4311_v46 = vpop.f32.mrf.mxu0  ;;  %v4349_v20 = vpop.f32.mrf.mxu1 }
 0xbde   :  { %4350 = vmatprep.subr.mxu0 %v4349_v20  ;;  %4370 = vmatprep.subr.mxu1 %v4311_v46 }
 0xbdf   :  { %v2718_v47 = vpop.f32.mrf.mxu0  ;;  %v2828_v48 = vpop.f32.mrf.mxu1  ;;  %4351 = vmatpush3.msra.mxu0 %v4349_v20  ;;  %4371 = vmatpush3.msra.mxu1 %v4311_v46  ;;  %v3209_v20 = vld [vmem:[#allocation12 + $0x88] sm:$0xff] }
 0xbe0   :  { %4352 = vmatprep.subr.mxu0 %v2828_v48  ;;  %4372 = vmatprep.subr.mxu1 %v2718_v47 }
 0xbe1   :  { %4353 = vmatpush3.msra.mxu0 %v2828_v48  ;;  %4373 = vmatpush3.msra.mxu1 %v2718_v47  ;;  %v3369_v47 = vld [vmem:[#allocation13 + $0x1f8] sm:$0xff]  ;;  %v3210_v48 = vld [vmem:[#allocation12 + $0x90] sm:$0xff] }
 0xbe2   :  { %4354 = vmatprep.subr.mxu0 %v4346_v43  ;;  %4374 = vmatprep.subr.mxu1 %v4308_v42 }
 0xbe3   :  { %4355 = vmatpush3.msra.mxu0 %v4346_v43  ;;  %4375 = vmatpush3.msra.mxu1 %v4308_v42 }
 0xbe4   :  { %4356 = vmatprep.subr.mxu0 %v2818_v45  ;;  %4376 = vmatprep.subr.mxu1 %v2708_v44 }
 0xbe5   :  { %4357 = vmatpush3.msra.mxu0 %v2818_v45  ;;  %4377 = vmatpush3.msra.mxu1 %v2708_v44 }
 0xbe6   :  { %4359 = vmatmul.mubr.msk.f32.vlgmr.msra.gmra.mxu0 %vm2846_vm4, %v2839_v49  ;;  %4379 = vmatmul.mubr.msk.f32.vlgmr.msra.gmra.mxu1 %vm2846_vm4, %v2728_v50  ;;  %v3368_v49 = vld [vmem:[#allocation13 + $0x1f0] sm:$0xff]  ;;  %v3211_v50 = vld [vmem:[#allocation12 + $0x98] sm:$0xff] }
 0xbe7   :  { %4390 = vmatprep.subr.mxu0 %v3121_v22  ;;  %4361 = vmatprep.mubr.msk.f32.mxu0 %vm2846_vm4, %v2840_v51  ;;  %v3212_v51 = vld [vmem:[#allocation12 + $0xa0] sm:$0xff] }
 0xbe8   :  { %4391 = vmatpush3.msra.mxu0 %v3121_v22  ;;  %4381 = vmatprep.mubr.msk.f32.mxu1 %vm2846_vm4, %v2729_v52  ;;  %v3367_v22 = vld [vmem:[#allocation13 + $0x1e8] sm:$0xff]  ;;  %v3366_v52 = vld [vmem:[#allocation13 + $0x1e0] sm:$0xff] }
 0xbe9   :  { %4392 = vmatprep.subr.mxu0 %v3120_v53 }
 0xbea   :  { %4393 = vmatpush3.msra.mxu0 %v3120_v53  ;;  %4382 = vmatmul.mubr.msk.f32.gmra.mxu1 %vm2846_vm4, %v2730_v54  ;;  %v3213_v53 = vld [vmem:[#allocation12 + $0xa8] sm:$0xff]  ;;  %v3365_v54 = vld [vmem:[#allocation13 + $0x1d8] sm:$0xff] }
 0xbeb   :  { %4362 = vmatmul.mubr.msk.f32.gmra.mxu0 %vm2846_vm4, %v2841_v55  ;;  %4394 = vmatprep.subr.mxu0 %v3119_v26  ;;  %v3214_v55 = vld [vmem:[#allocation12 + $0xb0] sm:$0xff] }
 0xbec   :  { %4395 = vmatpush3.msra.mxu0 %v3119_v26  ;;  %4364 = vmatprep.mubr.msk.f32.mxu0 %vm2846_vm4, %v2842_v56  ;;  %v3364_v26 = vld [vmem:[#allocation13 + $0x1d0] sm:$0xff]  ;;  %v3215_v56 = vld [vmem:[#allocation12 + $0xb8] sm:$0xff] }
 0xbed   :  { %4396 = vmatprep.subr.mxu0 %v3118_v57  ;;  %4384 = vmatprep.mubr.msk.f32.mxu1 %vm2846_vm4, %v2731_v58  ;;  %v3362_v58 = vld [vmem:[#allocation13 + $0x1c0] sm:$0xff] }
 0xbee   :  { %4397 = vmatpush3.msra.mxu0 %v3118_v57  ;;  %4385 = vmatmul.mubr.msk.f32.gmra.mxu1 %vm2846_vm4, %v2732_v59  ;;  %v3363_v57 = vld [vmem:[#allocation13 + $0x1c8] sm:$0xff]  ;;  %v3361_v59 = vld [vmem:[#allocation13 + $0x1b8] sm:$0xff] }
 0xbef   :  { %4365 = vmatmul.mubr.msk.f32.gmra.mxu0 %vm2846_vm4, %v2843_v60  ;;  %4398 = vmatprep.subr.mxu0 %v3117_v0  ;;  %v3360_v60 = vld [vmem:[#allocation13 + $0x1b0] sm:$0xff] }
 0xbf0   :  { %4399 = vmatpush3.msra.mxu0 %v3117_v0  ;;  %4367 = vmatprep.mubr.msk.f32.mxu0 %vm2846_vm4, %v2844_v62  ;;  %v3359_v0 = vld [vmem:[#allocation13 + $0x1a8] sm:$0xff]  ;;  %v3358_v62 = vld [vmem:[#allocation13 + $0x1a0] sm:$0xff] }
 0xbf1   :  { %4400 = vmatprep.subr.mxu0 %v3116_v63  ;;  %4387 = vmatprep.mubr.msk.f32.mxu1 %vm2846_vm4, %v2733_v1  ;;  %v3356_v1 = vld [vmem:[#allocation13 + $0x190] sm:$0xff] }
 0xbf2   :  { %4401 = vmatpush3.msra.mxu0 %v3116_v63  ;;  %4388 = vmatmul.mubr.msk.f32.gmra.mxu1 %vm2846_vm4, %v2734_v3  ;;  %v3357_v63 = vld [vmem:[#allocation13 + $0x198] sm:$0xff]  ;;  %v3355_v3 = vld [vmem:[#allocation13 + $0x188] sm:$0xff] }
 0xbf3   :  { %4368 = vmatmul.mubr.msk.f32.gmra.mxu0 %vm2846_vm4, %v2845_v5  ;;  %4402 = vmatprep.subr.mxu0 %v3115_v6  ;;  %v3456_v5 = vld [vmem:[#allocation12 + $0xc0] sm:$0xff] }
 0xbf4   :  { %4403 = vmatpush3.msra.mxu0 %v3115_v6  ;;  %4422 = vmatprep.mubr.f32.mxu0 %v4994_v35 }
 0xbf5   :  { %4404 = vmatprep.subr.mxu0 %v3114_v7  ;;  %4436 = vmatprep.mubr.msk.f32.mxu1 %vm2846_vm4, %v3208_v14 }
 0xbf6   :  { %4405 = vmatpush3.msra.mxu0 %v3114_v7 }
 0xbf7   :  { %4406 = vmatprep.subr.mxu0 %v3113_v8 }
 0xbf8   :  { %4407 = vmatpush3.msra.mxu0 %v3113_v8 }
 0xbf9   :  { %4408 = vmatprep.subr.mxu0 %v3112_v9 }
 0xbfa   :  { %4409 = vmatpush3.msra.mxu0 %v3112_v9 }
 0xbfb   :  { %4410 = vmatprep.subr.mxu0 %v3111_v4 }
 0xbfc   :  { %4411 = vmatpush3.msra.mxu0 %v3111_v4 }
 0xbfd   :  { %4412 = vmatprep.subr.mxu0 %v3110_v10 }
 0xbfe   :  { %4413 = vmatpush3.msra.mxu0 %v3110_v10 }
 0xbff   :  { %4414 = vmatprep.subr.mxu0 %v3109_v61 }
 0xc00   :  { %4415 = vmatpush3.msra.mxu0 %v3109_v61 }
 0xc01   :  { %4416 = vmatprep.subr.mxu0 %v3108_v11 }
 0xc02   :  { %4417 = vmatpush3.msra.mxu0 %v3108_v11 }
 0xc03   :  { %4418 = vmatprep.subr.mxu0 %v3107_v12 }
 0xc04   :  { %4419 = vmatpush3.msra.mxu0 %v3107_v12 }
 0xc05   :  { %4420 = vmatprep.subr.mxu0 %v3106_v13 }
 0xc06   :  { %4421 = vmatpush3.msra.mxu0 %v3106_v13 }
 0xc07   :  { %4423 = vmatmul.mubr.f32.vlgmr.msra.gmra.mxu0 %v4996_v36 }
 0xc08   :  { %4425 = vmatprep.mubr.f32.mxu0 %v5000_v38 }
 0xc0b   :  { %4426 = vmatmul.mubr.f32.gmra.mxu0 %v5006_v39 }
 0xc0c   :  { %4494 = vmatprep.mubr.msk.f32.mxu0 %vm2846_vm4, %v3456_v5 }
 0xca6   :  { %v4360_v15 = vpop.f32.mrf.mxu0  ;;  %v4380_v16 = vpop.f32.mrf.mxu1 }
 0xca7   :  { %v5031_v17 = vadd.f32 %v4380_v16, %v4360_v15 }
 0xca8   :  { %v2937_v18 = vpop.f32.mrf.mxu0  ;;  %v3066_v19 = vpop.f32.mrf.mxu1 }
 0xca9   :  { %v5033_v21 = vadd.f32 %v3066_v19, %v2937_v18 }
 0xcaa   :  { %v4383_v23 = vpop.f32.mrf.mxu1 }
 0xcab   :  { %v4363_v24 = vpop.f32.mrf.mxu0 }
 0xcac   :  { %v5035_v25 = vadd.f32 %v4383_v23, %v4363_v24  ;;  %v3076_v27 = vpop.f32.mrf.mxu1 }
 0xcad   :  { %v2947_v28 = vpop.f32.mrf.mxu0 }
 0xcae   :  { %v5037_v29 = vadd.f32 %v3076_v27, %v2947_v28  ;;  %v4386_v2 = vpop.f32.mrf.mxu1  ;;  %v3458_v27 = vld [vmem:[#allocation12 + $0xd0] sm:$0xff]  ;;  %v3459_v28 = vld [vmem:[#allocation12 + $0xd8] sm:$0xff] }
 0xcaf   :  { %v4366_v30 = vpop.f32.mrf.mxu0 }
 0xcb0   :  { %v5039_v31 = vadd.f32 %v4386_v2, %v4366_v30  ;;  %v3086_v32 = vpop.f32.mrf.mxu1  ;;  %v3461_v2 = vld [vmem:[#allocation12 + $0xe8] sm:$0xff]  ;;  %v3462_v30 = vld [vmem:[#allocation12 + $0xf0] sm:$0xff] }
 0xcb1   :  { %v2957_v33 = vpop.f32.mrf.mxu0 }
 0xcb2   :  { %v5041_v34 = vadd.f32 %v3086_v32, %v2957_v33  ;;  %v4389_v40 = vpop.f32.mrf.mxu1 }
 0xcb3   :  { %v4369_v37 = vpop.f32.mrf.mxu0 }
 0xcb4   :  { %v5043_v41 = vadd.f32 %v4389_v40, %v4369_v37  ;;  %v3096_v6 = vpop.f32.mrf.mxu1 }
 0xcb5   :  { %v5045_v42 = vpop.f32.mrf.mxu0 }
 0xcb6   :  { %v3097_v15 = vadd.f32 %v3096_v6, %v5045_v42 }
 0xcc7   :  { %v4424_v43 = vpop.f32.mrf.mxu0 }
 0xcc9   :  { %v3188_v44 = vpop.f32.mrf.mxu0 }
 0xccb   :  { %v4427_v45 = vpop.f32.mrf.mxu0 }
 0xccc   :  { %4428 = vmatprep.subr.mxu1 %v4427_v45 }
 0xccd   :  { %v3198_v46 = vpop.f32.mrf.mxu0  ;;  %4429 = vmatpush3.msra.mxu1 %v4427_v45 }
 0xcce   :  { %4430 = vmatprep.subr.mxu1 %v3198_v46 }
 0xccf   :  { %4431 = vmatpush3.msra.mxu1 %v3198_v46 }
 0xcd0   :  { %4432 = vmatprep.subr.mxu1 %v4424_v43 }
 0xcd1   :  { %4433 = vmatpush3.msra.mxu1 %v4424_v43 }
 0xcd2   :  { %4434 = vmatprep.subr.mxu1 %v3188_v44 }
 0xcd3   :  { %4435 = vmatpush3.msra.mxu1 %v3188_v44 }
 0xcd4   :  { %4437 = vmatmul.mubr.msk.f32.vlgmr.msra.gmra.mxu1 %vm2846_vm4, %v3209_v20  ;;  %4448 = vmatprep.subr.mxu1 %v3369_v47 }
 0xcd5   :  { %4449 = vmatpush3.msra.mxu1 %v3369_v47  ;;  %4439 = vmatprep.mubr.msk.f32.mxu1 %vm2846_vm4, %v3210_v48 }
 0xcd6   :  { %4450 = vmatprep.subr.mxu1 %v3368_v49 }
 0xcd7   :  { %4451 = vmatpush3.msra.mxu1 %v3368_v49 }
 0xcd8   :  { %4440 = vmatmul.mubr.msk.f32.gmra.mxu1 %vm2846_vm4, %v3211_v50  ;;  %4452 = vmatprep.subr.mxu1 %v3367_v22 }
 0xcd9   :  { %4453 = vmatpush3.msra.mxu1 %v3367_v22  ;;  %4442 = vmatprep.mubr.msk.f32.mxu1 %vm2846_vm4, %v3212_v51 }
 0xcda   :  { %4454 = vmatprep.subr.mxu1 %v3366_v52 }
 0xcdb   :  { %4455 = vmatpush3.msra.mxu1 %v3366_v52 }
 0xcdc   :  { %4443 = vmatmul.mubr.msk.f32.gmra.mxu1 %vm2846_vm4, %v3213_v53  ;;  %4456 = vmatprep.subr.mxu1 %v3365_v54 }
 0xcdd   :  { %4457 = vmatpush3.msra.mxu1 %v3365_v54  ;;  %4445 = vmatprep.mubr.msk.f32.mxu1 %vm2846_vm4, %v3214_v55 }
 0xcde   :  { %4458 = vmatprep.subr.mxu1 %v3364_v26 }
 0xcdf   :  { %4459 = vmatpush3.msra.mxu1 %v3364_v26 }
 0xce0   :  { %4446 = vmatmul.mubr.msk.f32.gmra.mxu1 %vm2846_vm4, %v3215_v56  ;;  %4460 = vmatprep.subr.mxu1 %v3363_v57 }
 0xce1   :  { %4461 = vmatpush3.msra.mxu1 %v3363_v57  ;;  %4480 = vmatprep.mubr.f32.mxu1 %v4994_v35  ;;  %v3354_v35 = vld [vmem:[#allocation13 + $0x180] sm:$0xff] }
 0xce2   :  { %4462 = vmatprep.subr.mxu1 %v3362_v58 }
 0xce3   :  { %4463 = vmatpush3.msra.mxu1 %v3362_v58 }
 0xce4   :  { %4464 = vmatprep.subr.mxu1 %v3361_v59 }
 0xce5   :  { %4465 = vmatpush3.msra.mxu1 %v3361_v59 }
 0xce6   :  { %4466 = vmatprep.subr.mxu1 %v3360_v60 }
 0xce7   :  { %4467 = vmatpush3.msra.mxu1 %v3360_v60 }
 0xce8   :  { %4468 = vmatprep.subr.mxu1 %v3359_v0 }
 0xce9   :  { %4469 = vmatpush3.msra.mxu1 %v3359_v0 }
 0xcea   :  { %4470 = vmatprep.subr.mxu1 %v3358_v62 }
 0xceb   :  { %4471 = vmatpush3.msra.mxu1 %v3358_v62 }
 0xcec   :  { %4472 = vmatprep.subr.mxu1 %v3357_v63 }
 0xced   :  { %4473 = vmatpush3.msra.mxu1 %v3357_v63 }
 0xcee   :  { %4474 = vmatprep.subr.mxu1 %v3356_v1 }
 0xcef   :  { %4475 = vmatpush3.msra.mxu1 %v3356_v1 }
 0xcf0   :  { %4476 = vmatprep.subr.mxu1 %v3355_v3 }
 0xcf1   :  { %4477 = vmatpush3.msra.mxu1 %v3355_v3 }
 0xcf2   :  { %4478 = vmatprep.subr.mxu1 %v3354_v35 }
 0xcf3   :  { %4479 = vmatpush3.msra.mxu1 %v3354_v35 }
 0xcf4   :  { %4481 = vmatmul.mubr.f32.vlgmr.msra.gmra.mxu1 %v4996_v36 }
 0xcf5   :  { %4483 = vmatprep.mubr.f32.mxu1 %v5000_v38 }
 0xcf8   :  { %4484 = vmatmul.mubr.f32.gmra.mxu1 %v5006_v39 }
 0xd94   :  { %v4438_v7 = vpop.f32.mrf.mxu1 }
 0xd95   :  { %v3346_v8 = vadd.f32 %v4438_v7, %v5031_v17 }
 0xd96   :  { %v3306_v9 = vpop.f32.mrf.mxu1 }
 0xd97   :  { %v3345_v4 = vadd.f32 %v3306_v9, %v5033_v21 }
 0xd98   :  { %v4441_v10 = vpop.f32.mrf.mxu1 }
 0xd99   :  { %v3348_v61 = vadd.f32 %v4441_v10, %v5035_v25  ;;  %v3457_v25 = vld [vmem:[#allocation12 + $0xc8] sm:$0xff] }
 0xd9a   :  { %v3316_v11 = vpop.f32.mrf.mxu1 }
 0xd9b   :  { %v3347_v36 = vadd.f32 %v3316_v11, %v5037_v29  ;;  %v3460_v29 = vld [vmem:[#allocation12 + $0xe0] sm:$0xff] }
 0xd9c   :  { %v4444_v12 = vpop.f32.mrf.mxu1 }
 0xd9d   :  { %v3350_v38 = vadd.f32 %v4444_v12, %v5039_v31  ;;  %v3463_v31 = vld [vmem:[#allocation12 + $0xf8] sm:$0xff] }
 0xd9e   :  { %v3326_v39 = vpop.f32.mrf.mxu1 }
 0xd9f   :  { %v3349_v13 = vadd.f32 %v3326_v39, %v5041_v34 }
 0xda0   :  { %v4447_v14 = vpop.f32.mrf.mxu1 }
 0xda1   :  { %v3352_v16 = vadd.f32 %v4447_v14, %v5043_v41 }
 0xda2   :  { %v3336_v17 = vpop.f32.mrf.mxu1 }
 0xda3   :  { %v3351_v18 = vadd.f32 %v3336_v17, %v3097_v15 }
 0xdb4   :  { %v4482_v19 = vpop.f32.mrf.mxu1 }
 0xdb6   :  { %v3436_v21 = vpop.f32.mrf.mxu1 }
 0xdb8   :  { %v4485_v23 = vpop.f32.mrf.mxu1 }
 0xdb9   :  { %4486 = vmatprep.subr.mxu0 %v4485_v23 }
 0xdba   :  { %v3446_v24 = vpop.f32.mrf.mxu1  ;;  %4487 = vmatpush3.msra.mxu0 %v4485_v23 }
 0xdbb   :  { %4488 = vmatprep.subr.mxu0 %v3446_v24 }
 0xdbc   :  { %4489 = vmatpush3.msra.mxu0 %v3446_v24 }
 0xdbd   :  { %4490 = vmatprep.subr.mxu0 %v4482_v19 }
 0xdbe   :  { %4491 = vmatpush3.msra.mxu0 %v4482_v19 }
 0xdbf   :  { %4492 = vmatprep.subr.mxu0 %v3436_v21 }
 0xdc0   :  { %4493 = vmatpush3.msra.mxu0 %v3436_v21 }
 0xdc1   :  { %4495 = vmatmul.mubr.msk.f32.vlgmr.msra.gmra.mxu0 %vm2846_vm4, %v3457_v25 }
 0xdc2   :  { %4497 = vmatprep.mubr.msk.f32.mxu0 %vm2846_vm4, %v3458_v27 }
 0xdc5   :  { %4498 = vmatmul.mubr.msk.f32.gmra.mxu0 %vm2846_vm4, %v3459_v28 }
 0xdc6   :  { %4500 = vmatprep.mubr.msk.f32.mxu0 %vm2846_vm4, %v3460_v29 }
 0xdc9   :  { %4501 = vmatmul.mubr.msk.f32.gmra.mxu0 %vm2846_vm4, %v3461_v2 }
 0xdca   :  { %4503 = vmatprep.mubr.msk.f32.mxu0 %vm2846_vm4, %v3462_v30 }
 0xdcd   :  { %4504 = vmatmul.mubr.msk.f32.gmra.mxu0 %vm2846_vm4, %v3463_v31 }
 0xe81   :  { %v4496_v32 = vpop.f32.mrf.mxu0 }
 0xe82   :  { %v3594_v33 = vadd.f32 %v4496_v32, %v3346_v8 }
 0xe83   :  { %v3554_v34 = vpop.f32.mrf.mxu0 }
 0xe84   :  { %4527 = vtanh.f32 %v3594_v33  ;;  %v3593_v37 = vadd.f32 %v3554_v34, %v3345_v4 }
 0xe85   :  { %v4499_v40 = vpop.f32.mrf.mxu0 }
 0xe86   :  { %4529 = vtanh.f32 %v3593_v37  ;;  %v3596_v41 = vadd.f32 %v4499_v40, %v3348_v61 }
 0xe87   :  { %v3564_v42 = vpop.f32.mrf.mxu0 }
 0xe88   :  { %4531 = vtanh.f32 %v3596_v41  ;;  %v3595_v43 = vadd.f32 %v3564_v42, %v3347_v36 }
 0xe89   :  { %v4502_v44 = vpop.f32.mrf.mxu0 }
 0xe8a   :  { %4533 = vtanh.f32 %v3595_v43  ;;  %v3598_v45 = vadd.f32 %v4502_v44, %v3350_v38 }
 0xe8b   :  { %v3574_v46 = vpop.f32.mrf.mxu0 }
 0xe8c   :  { %4535 = vtanh.f32 %v3598_v45  ;;  %v3597_v20 = vadd.f32 %v3574_v46, %v3349_v13 }
 0xe8d   :  { %v4505_v47 = vpop.f32.mrf.mxu0 }
 0xe8e   :  { %4537 = vtanh.f32 %v3597_v20  ;;  %v3600_v48 = vadd.f32 %v4505_v47, %v3352_v16 }
 0xe8f   :  { %v3584_v49 = vpop.f32.mrf.mxu0 }
 0xe90   :  { %4539 = vtanh.f32 %v3600_v48  ;;  %v3599_v50 = vadd.f32 %v3584_v49, %v3351_v18 }
 0xe91   :  { %v4528_v22 = vpop.eup %4527 }
 0xe92   :  { %3610 = vst [vmem:[%s5113_s15 + $0x8] sm:$0xff] %v4528_v22  ;;  %4541 = vtanh.f32 %v3599_v50 }
 0xe93   :  { %v4530_v51 = vpop.eup %4529 }
 0xe94   :  { %3609 = vst [vmem:[%s5113_s15] sm:$0xff] %v4530_v51 }
 0xe95   :  { %v4532_v52 = vpop.eup %4531 }
 0xe96   :  { %3612 = vst [vmem:[%s5113_s15 + $0x18] sm:$0xff] %v4532_v52 }
 0xe97   :  { %v4534_v53 = vpop.eup %4533 }
 0xe98   :  { %3611 = vst [vmem:[%s5113_s15 + $0x10] sm:$0xff] %v4534_v53 }
 0xe99   :  { %v4536_v54 = vpop.eup %4535 }
 0xe9a   :  { %3614 = vst [vmem:[%s5113_s15 + $0x28] sm:$0xff] %v4536_v54 }
 0xe9b   :  { %v4538_v55 = vpop.eup %4537 }
 0xe9c   :  { %3613 = vst [vmem:[%s5113_s15 + $0x20] sm:$0xff] %v4538_v55 }
 0xe9d   :  { %v4540_v26 = vpop.eup %4539 }
 0xe9e   :  { %3616 = vst [vmem:[%s5113_s15 + $0x38] sm:$0xff] %v4540_v26 }
 0xe9f   :  { %v4542_v56 = vpop.eup %4541 }
 0xea0   :  { %3615 = vst [vmem:[%s5113_s15 + $0x30] sm:$0xff] %v4542_v56 }
 0xea1   :  { %3621 = vsyncpa [#allocation3], 1 }
 0xea2   :  { %3622 = vsyncpa [#allocation5], 1 }
 0xea3   :  { %3623 = vsyncpa [#allocation8], 1 }
 0xea4   :  { %3624 = vsyncpa [#allocation11], 1 }
 0xea5   :  { %3625 = vsyncpa [#allocation14], 1 }

</bundles_post_ra>
